<compile_context>
chip_gen: v7x
topology: tpu7x:2x2x1
jax: 0.10.0
libtpu: 0.0.40
codegen_flags: <defaults>
</compile_context>

<pallas_src>
import math
import functools

import jax
import jax.numpy as jnp
import numpy as np
from jax import lax
from jax.experimental import pallas as pl
from jax.experimental.pallas import tpu as pltpu

_SQRT1_2 = 1.0 / math.sqrt(2.0)


# --------------------------------------------------------------------------
# Capability / budget helpers
# --------------------------------------------------------------------------
def _probe_copy_kernel(x_ref, o_ref):
    o_ref[...] = x_ref[...]


@functools.lru_cache(maxsize=None)
def _single_buffer_mode():
    """Decide ONCE whether pipeline_mode=pl.Buffered(1) is usable.

    The real kernels then issue a single, unguarded pallas_call each, so a
    genuine compile error in them is never masked.
    """
    if not hasattr(pl, "Buffered"):
        return None
    mode = pl.Buffered(1)
    try:
        fn = pl.pallas_call(
            _probe_copy_kernel,
            out_shape=jax.ShapeDtypeStruct((8, 128), jnp.float32),
            grid=(1,),
            in_specs=[pl.BlockSpec((8, 128), lambda i: (0, 0),
                                   pipeline_mode=mode)],
            out_specs=pl.BlockSpec((8, 128), lambda i: (0, 0)),
        )
        jax.block_until_ready(fn(jnp.zeros((8, 128), jnp.float32)))
        return mode
    except Exception:          # Buffered(1) unsupported on this jax/libtpu
        return None


def _resident_spec(shape):
    """BlockSpec for a block whose index_map is constant over the grid."""
    zeros = (0,) * len(shape)
    imap = lambda *_: zeros
    mode = _single_buffer_mode()
    if mode is not None:
        return pl.BlockSpec(shape, imap, pipeline_mode=mode)
    return pl.BlockSpec(shape, imap)


def _vmem_cap_bytes():
    """Physical VMEM per TensorCore minus ~8 MiB headroom (generation aware)."""
    try:
        cap = int(pltpu.get_tpu_info().vmem_capacity_bytes)
    except Exception:          # info query unavailable -> assume v7x (64 MiB)
        cap = 64 << 20
    cap = min(cap, 128 << 20)
    return max(cap - (8 << 20), 16 << 20)


def _vmem_limit(est_bytes):
    return int(min(max(int(est_bytes) + (4 << 20), 16 << 20), _vmem_cap_bytes()))


# --------------------------------------------------------------------------
# Kernel A: norm1 + best-hypothesis multi-head attention + gated residual
# --------------------------------------------------------------------------
def _attn_kernel(xq_ref, xkv_ref, wq_ref, wk_ref, wv_ref, wo_ref, bo_ref,
                 g1_ref, b1_ref, xo_ref, aw_ref, k_sc, v_sc, o_sc,
                 *, heads, eps, approx_recip):
    cdt = k_sc.dtype                       # MXU input dtype (f32 or bf16)
    S, D = k_sc.shape
    dh = D // heads

    def layer_norm(z):
        mu = jnp.mean(z, axis=-1, keepdims=True)
        zc = z - mu
        var = jnp.mean(zc * zc, axis=-1, keepdims=True)
        return zc * lax.rsqrt(var + eps) * g1_ref[...] + b1_ref[...]

    # K / V for the full sequence: computed once per batch row (qi == 0) and
    # kept resident in VMEM scratch across the query-tile axis.
    @pl.when(pl.program_id(1) == 0)
    def _():
        xn = layer_norm(xkv_ref[...].astype(jnp.float32)).astype(cdt)
        k_sc[...] = jnp.dot(xn, wk_ref[...],
                            preferred_element_type=jnp.float32).astype(cdt)
        v_sc[...] = jnp.dot(xn, wv_ref[...],
                            preferred_element_type=jnp.float32).astype(cdt)

    xq = xq_ref[...].astype(jnp.float32)                       # (tq, D)
    qn = layer_norm(xq).astype(cdt)
    # 1/sqrt(dh) is folded into wq in the wrapper.
    q = jnp.dot(qn, wq_ref[...], preferred_element_type=jnp.float32)

    attn_sum = jnp.zeros((xq.shape[0], S), jnp.float32)
    for hd in range(heads):                                    # static unroll
        sl = slice(hd * dh, (hd + 1) * dh)
        dots = lax.dot_general(q[:, sl].astype(cdt), k_sc[:, sl],
                               (((1,), (1,)), ((), ())),
                               preferred_element_type=jnp.float32)   # (tq, S)
        m = jnp.max(dots, axis=-1, keepdims=True)
        e = jnp.exp(dots - m)
        a = e * pl.reciprocal(jnp.sum(e, axis=-1, keepdims=True),
                              approx=approx_recip)
        attn_sum = attn_sum + a
        # Direct write into the head-concat slab (no jnp.concatenate copy).
        o_sc[:, sl] = jnp.dot(a.astype(cdt), v_sc[:, sl],
                              preferred_element_type=jnp.float32).astype(cdt)

    # sigmoid(attn_gate) is folded into wo / bo in the wrapper.
    y = jnp.dot(o_sc[...], wo_ref[...],
                preferred_element_type=jnp.float32) + bo_ref[...]
    xo_ref[...] = (xq + y).astype(xo_ref.dtype)
    aw_ref[...] = (attn_sum * (1.0 / heads)).astype(aw_ref.dtype)


def _attention_block(x, params, heads, q_tile, compute_dtype):
    B, S, D = x.shape
    dh = D // heads
    cdt = jnp.float32 if compute_dtype is None else compute_dtype
    cs = jnp.dtype(cdt).itemsize
    approx_recip = compute_dtype is not None       # keep f32 path bit-tight

    best = jnp.argmax(params["hypothesis_weights"])            # eval: argmax
    scale = 1.0 / math.sqrt(dh)
    wq = (jnp.take(params["wq"], best, axis=0) * scale).astype(cdt)
    wk = jnp.take(params["wk"], best, axis=0).astype(cdt)
    wv = jnp.take(params["wv"], best, axis=0).astype(cdt)
    gate = jax.nn.sigmoid(params["attn_gate"])
    wo = (gate * params["wo"]).astype(cdt)
    bo = (gate * params["bo"]).reshape(1, D).astype(jnp.float32)
    g1 = params["ln1_g"].reshape(1, D)
    b1 = params["ln1_b"].reshape(1, D)

    # TODO(synk): pad/mask when S is not a multiple of q_tile instead of
    #             falling back to a full-sequence query tile.
    tq = q_tile if (q_tile < S and S % q_tile == 0) else S
    nq = S // tq
    aw_dtype = x.dtype                              # smaller S×S writeback

    kernel = functools.partial(_attn_kernel, heads=heads, eps=1e-5,
                               approx_recip=approx_recip)

    resident = sum(int(a.size) * a.dtype.itemsize
                   for a in (wq, wk, wv, wo, bo, g1, b1))
    tile = (3 * S * D * 4 + 2 * S * D * cs           # x_kv(x2)+xn, K/V scratch
            + 4 * tq * D * 4 + tq * D * cs           # x_q(x2)/q/y, o scratch
            + 6 * tq * S * 4                         # dots/e/a/attn_sum, aw(x2)
            + 2 * tq * D * x.dtype.itemsize)         # xo out (x2)
    limit = _vmem_limit(2 * resident + tile)

    x2, aw = pl.pallas_call(
        kernel,
        out_shape=(jax.ShapeDtypeStruct((B, S, D), x.dtype),
                   jax.ShapeDtypeStruct((B, S, S), aw_dtype)),
        grid=(B, nq),
        in_specs=[
            pl.BlockSpec((None, tq, D), lambda b, qi: (b, qi, 0)),  # query rows
            pl.BlockSpec((None, S, D), lambda b, qi: (b, 0, 0)),    # full x (K/V)
            _resident_spec((D, D)), _resident_spec((D, D)),         # wq, wk
            _resident_spec((D, D)), _resident_spec((D, D)),         # wv, wo
            _resident_spec((1, D)),                                 # bo (gated)
            _resident_spec((1, D)), _resident_spec((1, D)),         # ln1 g/b
        ],
        out_specs=(pl.BlockSpec((None, tq, D), lambda b, qi: (b, qi, 0)),
                   pl.BlockSpec((None, tq, S), lambda b, qi: (b, qi, 0))),
        scratch_shapes=[pltpu.VMEM((S, D), cdt),     # K (resident per batch row)
                        pltpu.VMEM((S, D), cdt),     # V
                        pltpu.VMEM((tq, D), cdt)],   # head-concat slab
        compiler_params=pltpu.CompilerParams(
            dimension_semantics=("parallel", "arbitrary"),
            vmem_limit_bytes=limit),
    )(x, x, wq, wk, wv, wo, bo, g1, b1)
    return x2, aw


# --------------------------------------------------------------------------
# Kernel B: norm2 + QuantumInterferenceFFN (hidden-chunk reduction) + residual
# --------------------------------------------------------------------------
def _ffn_kernel(x_ref, w1_ref, b1_ref, w2_ref, b2e_ref, g2_ref, be2_ref, o_ref,
                acc_ref, xn_ref, *, chunks_per_path, eps):
    k = pl.program_id(1)

    @pl.when(k == 0)
    def _():
        x = x_ref[...].astype(jnp.float32)
        mu = jnp.mean(x, axis=-1, keepdims=True)
        xc = x - mu
        var = jnp.mean(xc * xc, axis=-1, keepdims=True)
        xn_ref[...] = (xc * lax.rsqrt(var + eps) * g2_ref[...]
                       + be2_ref[...]).astype(xn_ref.dtype)
        acc_ref[...] = jnp.zeros_like(acc_ref)

    # First GEMM for this hidden-dim chunk (one path's slice of W1cat).
    h = jnp.dot(xn_ref[...], w1_ref[...],
                preferred_element_type=jnp.float32) + b1_ref[...]

    # Path activation (GELU / SiLU / ReLU by path % 3).  The path index is a
    # grid-step value, so blend the three elementwise results with scalar
    # 0/1 coefficients (cheap VALU/EUP work, MXU stays the bottleneck).
    pm = (k // chunks_per_path) % 3
    gelu = 0.5 * h * (1.0 + lax.erf(h * _SQRT1_2))
    silu = h * jax.nn.sigmoid(h)
    relu = jnp.maximum(h, 0.0)
    is0 = (pm == 0).astype(jnp.float32)
    is1 = (pm == 1).astype(jnp.float32)
    ha = is0 * gelu + is1 * silu + (1.0 - is0 - is1) * relu

    # Second GEMM: softmax(w)*cos(phase)*sigmoid(ffn_gate) is folded into
    # W2cat, so the interference sum happens in the f32 VMEM accumulator.
    acc_ref[...] += jnp.dot(ha.astype(w2_ref.dtype), w2_ref[...],
                            preferred_element_type=jnp.float32)

    @pl.when(k == pl.num_programs(1) - 1)
    def _():
        x = x_ref[...].astype(jnp.float32)
        o_ref[...] = (x + acc_ref[...] + b2e_ref[...]).astype(o_ref.dtype)


def _pick_h_chunk(inner, D, cdt_bytes):
    """Largest mult-of-128 divisor of `inner` whose streamed chunks fit budget."""
    budget = _vmem_cap_bytes() // 4
    cands = [c for c in range(128, inner + 1, 128) if inner % c == 0]
    if not cands:
        # TODO(synk): inner dims that are not a multiple of 128 use a single
        #             chunk per path (lane-padded by the compiler).
        return inner
    for c in reversed(cands):
        if 2 * 2 * c * D * cdt_bytes <= budget:    # double-buffered W1+W2 chunks
            return c
    return cands[0]


def _ffn_block(x2, params, training_step, row_tile, compute_dtype, h_chunk=None):
    B, S, D = x2.shape
    M = B * S
    P, _, H = params["w1"].shape
    cdt = jnp.float32 if compute_dtype is None else compute_dtype
    cs = jnp.dtype(cdt).itemsize

    weights = jax.nn.softmax(params["interference_weights"])
    phase = params["phase_shifts"] + training_step * 0.001 * (
        jnp.arange(P, dtype=jnp.float32) + 1.0)
    gate = jax.nn.sigmoid(params["ffn_gate"])
    coef = (gate * weights * jnp.cos(phase)).astype(jnp.float32)     # (P,)

    # Fused path weights; interference coefficients folded into W2 / b2.
    w1c = jnp.transpose(params["w1"], (1, 0, 2)).reshape(D, P * H).astype(cdt)
    b1c = params["b1"].reshape(1, P * H).astype(jnp.float32)
    w2c = (coef[:, None, None] * params["w2"]).reshape(P * H, D).astype(cdt)
    b2e = jnp.sum(coef[:, None] * params["b2"], axis=0).reshape(1, D)
    g2 = params["ln2_g"].reshape(1, D)
    be2 = params["ln2_b"].reshape(1, D)

    hc = h_chunk if h_chunk is not None else _pick_h_chunk(H, D, cs)
    hc = min(hc, H)
    if H % hc:
        hc = H
    cpp = H // hc                       # hidden chunks per path
    n_k = P * cpp                       # reduction-axis length

    x2d = x2.reshape(M, D)
    tm = min(row_tile, M)
    mp = ((M + tm - 1) // tm) * tm
    if mp != M:                         # padded LN rows are finite, sliced away
        x2d = jnp.pad(x2d, ((0, mp - M), (0, 0)))
    grid = (mp // tm, n_k)

    kernel = functools.partial(_ffn_kernel, chunks_per_path=cpp, eps=1e-5)
    est = (2 * 2 * hc * D * cs + 2 * hc * 4          # streamed W1/W2/b1 (x2 buf)
           + 4 * tm * D * 4 + tm * D * (4 + cs)      # x/out tiles + acc + xn
           + 5 * tm * hc * 4                         # h + activation temps
           + 8 * D * 4)
    limit = _vmem_limit(est)

    out2d = pl.pallas_call(
        kernel,
        out_shape=jax.ShapeDtypeStruct((mp, D), x2.dtype),
        grid=grid,
        in_specs=[
            pl.BlockSpec((tm, D), lambda i, k: (i, 0)),          # x2 row tile
            pl.BlockSpec((D, hc), lambda i, k: (0, k)),          # W1cat chunk
            pl.BlockSpec((1, hc), lambda i, k: (0, k)),          # b1cat chunk
            pl.BlockSpec((hc, D), lambda i, k: (k, 0)),          # W2cat chunk
            _resident_spec((1, D)),                              # b2_eff
            _resident_spec((1, D)), _resident_spec((1, D)),      # ln2 g/b
        ],
        out_specs=pl.BlockSpec((tm, D), lambda i, k: (i, 0)),
        scratch_shapes=[pltpu.VMEM((tm, D), jnp.float32),        # accumulator
                        pltpu.VMEM((tm, D), cdt)],               # norm2(x2) tile
        compiler_params=pltpu.CompilerParams(
            dimension_semantics=("parallel", "arbitrary"),
            vmem_limit_bytes=limit),
    )(x2d, w1c, b1c, w2c, b2e, g2, be2)
    return out2d[:M].reshape(B, S, D)


# --------------------------------------------------------------------------
# Public forward
# --------------------------------------------------------------------------
def quantum_residual_block(x, params, training_step=0, heads=8,
                           row_tile=512, q_tile=256, compute_dtype=None,
                           h_chunk=None):
    """Eval-mode forward of QuantumResidualBlock. Returns (out, attn_weights).

    row_tile/q_tile: 256-512 works across v5e/v6e/v7x (VMEM budget is capped
    per generation).  compute_dtype=jnp.bfloat16 enables the bf16 MXU path for
    both attention and FFN matmuls (f32 accumulation / LayerNorm / softmax).
    """
    x2, attn_w = _attention_block(x, params, heads, q_tile, compute_dtype)
    out = _ffn_block(x2, params, training_step, row_tile, compute_dtype, h_chunk)
    return out, attn_w


# --------------------------------------------------------------------------
# Params + pure-JAX reference (eval-mode PyTorch semantics)
# --------------------------------------------------------------------------
def _activation(h, path_idx):
    m = path_idx % 3
    if m == 0:
        return 0.5 * h * (1.0 + lax.erf(h * _SQRT1_2))    # exact GELU
    if m == 1:
        return h * jax.nn.sigmoid(h)                      # SiLU
    return jnp.maximum(h, 0.0)                            # ReLU


def init_params(key, dim, heads=8, mult=4, num_paths=3, uncertainty_samples=4):
    inner = int(dim * mult)
    ks = jax.random.split(key, 16)

    def uni(k, shape, fan_in):
        b = 1.0 / math.sqrt(fan_in)
        return jax.random.uniform(k, shape, jnp.float32, -b, b)

    return dict(
        wq=uni(ks[0], (uncertainty_samples, dim, dim), dim),
        wk=uni(ks[1], (uncertainty_samples, dim, dim), dim),
        wv=uni(ks[2], (uncertainty_samples, dim, dim), dim),
        wo=uni(ks[3], (dim, dim), dim),
        bo=uni(ks[4], (dim,), dim),
        hypothesis_weights=jax.random.normal(ks[5], (uncertainty_samples,), jnp.float32),
        ln1_g=1.0 + 0.1 * jax.random.normal(ks[6], (dim,), jnp.float32),
        ln1_b=0.1 * jax.random.normal(ks[7], (dim,), jnp.float32),
        ln2_g=1.0 + 0.1 * jax.random.normal(ks[8], (dim,), jnp.float32),
        ln2_b=0.1 * jax.random.normal(ks[9], (dim,), jnp.float32),
        attn_gate=jnp.asarray(0.3, jnp.float32),
        ffn_gate=jnp.asarray(-0.2, jnp.float32),
        w1=jnp.stack([uni(kk, (dim, inner), dim)
                      for kk in jax.random.split(ks[10], num_paths)]),
        b1=0.1 * jax.random.normal(ks[11], (num_paths, inner), jnp.float32),
        w2=jnp.stack([uni(kk, (inner, dim), inner)
                      for kk in jax.random.split(ks[12], num_paths)]),
        b2=0.1 * jax.random.normal(ks[13], (num_paths, dim), jnp.float32),
        interference_weights=jax.random.normal(ks[14], (num_paths,), jnp.float32),
        phase_shifts=0.1 * jax.random.normal(ks[15], (num_paths,), jnp.float32),
    )


def reference(x, params, training_step=0, heads=8, eps=1e-5):
    B, S, D = x.shape
    dh = D // heads

    def ln(z, g, b):
        mu = z.mean(-1, keepdims=True)
        var = ((z - mu) ** 2).mean(-1, keepdims=True)
        return (z - mu) * lax.rsqrt(var + eps) * g + b

    h1 = ln(x, params["ln1_g"], params["ln1_b"])
    best = jnp.argmax(params["hypothesis_weights"])
    wq = jnp.take(params["wq"], best, axis=0)
    wk = jnp.take(params["wk"], best, axis=0)
    wv = jnp.take(params["wv"], best, axis=0)
    q = (h1 @ wq).reshape(B, S, heads, dh).transpose(0, 2, 1, 3)
    k = (h1 @ wk).reshape(B, S, heads, dh).transpose(0, 2, 1, 3)
    v = (h1 @ wv).reshape(B, S, heads, dh).transpose(0, 2, 1, 3)
    dots = jnp.einsum("bhqd,bhkd->bhqk", q, k) * (dh ** -0.5)
    attn = jax.nn.softmax(dots, axis=-1)
    o = jnp.einsum("bhqk,bhkd->bhqd", attn, v).transpose(0, 2, 1, 3).reshape(B, S, D)
    attn_out = o @ params["wo"] + params["bo"]
    x2 = x + jax.nn.sigmoid(params["attn_gate"]) * attn_out

    h2 = ln(x2, params["ln2_g"], params["ln2_b"])
    P = params["w1"].shape[0]
    weights = jax.nn.softmax(params["interference_weights"])
    ffn = jnp.zeros_like(x2)
    for i in range(P):
        hh = h2 @ params["w1"][i] + params["b1"][i]
        hh = _activation(hh, i)
        y = hh @ params["w2"][i] + params["b2"][i]
        phase = params["phase_shifts"][i] + training_step * 0.001 * (i + 1)
        ffn = ffn + weights[i] * jnp.cos(phase) * y
    out = x2 + jax.nn.sigmoid(params["ffn_gate"]) * ffn
    return out, attn.mean(axis=1)


if __name__ == "__main__":
    key = jax.random.PRNGKey(0)
    kx, kp = jax.random.split(key)

    batch, seq, dim, heads, mult, num_paths = 2, 8, 64, 8, 4, 3
    x = jax.random.normal(kx, (batch, seq, dim), jnp.float32)
    params = init_params(kp, dim, heads=heads, mult=mult, num_paths=num_paths)

    # f32 path — tight tolerance vs. the pure-JAX reference.
    out, attn_w = quantum_residual_block(x, params, training_step=5, heads=heads)
    out = jax.block_until_ready(out)
    attn_w = jax.block_until_ready(attn_w)

    ref_out, ref_aw = reference(x, params, training_step=5, heads=heads)
    ref_out = jax.block_until_ready(ref_out)
    np.testing.assert_allclose(np.asarray(out), np.asarray(ref_out),
                               rtol=2e-5, atol=2e-5)
    np.testing.assert_allclose(np.asarray(attn_w), np.asarray(ref_aw),
                               rtol=2e-5, atol=2e-5)

    # bf16 MXU fast path (attention + FFN) — looser tolerance.
    out_bf16, _ = quantum_residual_block(x, params, training_step=5, heads=heads,
                                         compute_dtype=jnp.bfloat16)
    out_bf16 = jax.block_until_ready(out_bf16)
    np.testing.assert_allclose(np.asarray(out_bf16), np.asarray(ref_out),
                               rtol=5e-2, atol=5e-2)

    print("KERNEL_OK")
</pallas_src>

<mosaic_0001>
module attributes {stable_mosaic.version = 11 : i64} {
  func.func @_probe_copy_kernel(%arg0: i32, %arg1: memref<8x128xf32, #tpu.memory_space<vmem>>, %arg2: memref<8x128xf32, #tpu.memory_space<vmem>>) attributes {dimension_semantics = [#tpu.dimension_semantics<arbitrary>], iteration_bounds = array<i64: 1>, scalar_prefetch = 0 : i64, scratch_operands = 0 : i64, tpu.core_type = #tpu.core_type<tc>, window_params = [{pipeline_mode = #tpu.pipeline_mode<synchronous>, transform_indices = @transform_0, window_bounds = array<i64: 8, 128>}, {pipeline_mode = #tpu.pipeline_mode<synchronous>, transform_indices = @transform_1, window_bounds = array<i64: 8, 128>}]} {
    %c0 = arith.constant 0 : index
    %c0_0 = arith.constant 0 : index
    %0 = vector.load %arg1[%c0, %c0_0] : memref<8x128xf32, #tpu.memory_space<vmem>>, vector<8x128xf32>
    %c0_1 = arith.constant 0 : index
    %c0_2 = arith.constant 0 : index
    %1 = vector.load %arg2[%c0_1, %c0_2] : memref<8x128xf32, #tpu.memory_space<vmem>>, vector<8x128xf32>
    tpu.vector_store %arg2[%c0_1, %c0_2], %0 {strides = array<i32>} : memref<8x128xf32, #tpu.memory_space<vmem>>, vector<8x128xf32>,
    return
  }
  func.func @transform_0(%arg0: i32) -> (i32, i32) {
    %c0_i32 = arith.constant 0 : i32
    %c0_i32_0 = arith.constant 0 : i32
    %c0_i32_1 = arith.constant 0 : i32
    return %c0_i32, %c0_i32_0 : i32, i32
  }
  func.func @transform_1(%arg0: i32) -> (i32, i32) {
    %c0_i32 = arith.constant 0 : i32
    %c0_i32_0 = arith.constant 0 : i32
    %c0_i32_1 = arith.constant 0 : i32
    return %c0_i32, %c0_i32_0 : i32, i32
  }
}

module attributes {stable_mosaic.version = 11 : i64} {
  func.func @_attn_kernel(%arg0: i32, %arg1: i32, %arg2: memref<1x8x64xf32, #tpu.memory_space<vmem>>, %arg3: memref<1x8x64xf32, #tpu.memory_space<vmem>>, %arg4: memref<64x64xf32, #tpu.memory_space<vmem>>, %arg5: memref<64x64xf32, #tpu.memory_space<vmem>>, %arg6: memref<64x64xf32, #tpu.memory_space<vmem>>, %arg7: memref<64x64xf32, #tpu.memory_space<vmem>>, %arg8: memref<1x64xf32, #tpu.memory_space<vmem>>, %arg9: memref<1x64xf32, #tpu.memory_space<vmem>>, %arg10: memref<1x64xf32, #tpu.memory_space<vmem>>, %arg11: memref<1x8x64xf32, #tpu.memory_space<vmem>>, %arg12: memref<1x8x8xf32, #tpu.memory_space<vmem>>, %arg13: memref<8x64xf32, #tpu.memory_space<vmem>>, %arg14: memref<8x64xf32, #tpu.memory_space<vmem>>, %arg15: memref<8x64xf32, #tpu.memory_space<vmem>>) attributes {dimension_semantics = [#tpu.dimension_semantics<parallel>, #tpu.dimension_semantics<arbitrary>], iteration_bounds = array<i64: 2, 1>, scalar_prefetch = 0 : i64, scratch_operands = 3 : i64, tpu.core_type = #tpu.core_type<tc>, window_params = [{transform_indices = @transform_0, window_bounds = array<i64: 1, 8, 64>}, {transform_indices = @transform_1, window_bounds = array<i64: 1, 8, 64>}, {pipeline_mode = #tpu.pipeline_mode<synchronous>, transform_indices = @transform_2, window_bounds = array<i64: 64, 64>}, {pipeline_mode = #tpu.pipeline_mode<synchronous>, transform_indices = @transform_3, window_bounds = array<i64: 64, 64>}, {pipeline_mode = #tpu.pipeline_mode<synchronous>, transform_indices = @transform_4, window_bounds = array<i64: 64, 64>}, {pipeline_mode = #tpu.pipeline_mode<synchronous>, transform_indices = @transform_5, window_bounds = array<i64: 64, 64>}, {pipeline_mode = #tpu.pipeline_mode<synchronous>, transform_indices = @transform_6, window_bounds = array<i64: 1, 64>}, {pipeline_mode = #tpu.pipeline_mode<synchronous>, transform_indices = @transform_7, window_bounds = array<i64: 1, 64>}, {pipeline_mode = #tpu.pipeline_mode<synchronous>, transform_indices = @transform_8, window_bounds = array<i64: 1, 64>}, {transform_indices = @transform_9, window_bounds = array<i64: 1, 8, 64>}, {transform_indices = @transform_10, window_bounds = array<i64: 1, 8, 8>}]} {
    %c0_i32 = arith.constant 0 : i32
    %0 = arith.cmpi eq, %arg1, %c0_i32 : i32
    %1 = arith.extui %0 : i1 to i32
    %c0_i32_0 = arith.constant 0 : i32
    %2 = arith.cmpi ne, %1, %c0_i32_0 : i32
    scf.if %2 {
      %c0_102 = arith.constant 0 : index
      %c0_103 = arith.constant 0 : index
      %c0_104 = arith.constant 0 : index
      %181 = vector.load %arg3[%c0_102, %c0_103, %c0_104] : memref<1x8x64xf32, #tpu.memory_space<vmem>>, vector<1x8x64xf32>
      %182 = vector.shape_cast %181 : vector<1x8x64xf32> to vector<8x64xf32>
      %cst_105 = arith.constant dense<0.000000e+00> : vector<8xf32>
      %183 = vector.multi_reduction <add>, %182, %cst_105 [1] : vector<8x64xf32> to vector<8xf32>
      %184 = vector.shape_cast %183 : vector<8xf32> to vector<8x1xf32>
      %cst_106 = arith.constant 6.400000e+01 : f32
      %185 = vector.broadcast %cst_106 : f32 to vector<8x1xf32>
      %186 = arith.divf %184, %185 : vector<8x1xf32>
      %187 = vector.broadcast %186 : vector<8x1xf32> to vector<8x64xf32>
      %188 = arith.subf %182, %187 : vector<8x64xf32>
      %189 = arith.mulf %188, %188 : vector<8x64xf32>
      %cst_107 = arith.constant dense<0.000000e+00> : vector<8xf32>
      %190 = vector.multi_reduction <add>, %189, %cst_107 [1] : vector<8x64xf32> to vector<8xf32>
      %191 = vector.shape_cast %190 : vector<8xf32> to vector<8x1xf32>
      %cst_108 = arith.constant 6.400000e+01 : f32
      %192 = vector.broadcast %cst_108 : f32 to vector<8x1xf32>
      %193 = arith.divf %191, %192 : vector<8x1xf32>
      %cst_109 = arith.constant 9.99999974E-6 : f32
      %194 = vector.broadcast %cst_109 : f32 to vector<8x1xf32>
      %195 = arith.addf %193, %194 : vector<8x1xf32>
      %196 = math.rsqrt %195 : vector<8x1xf32>
      %197 = vector.broadcast %196 : vector<8x1xf32> to vector<8x64xf32>
      %198 = arith.mulf %188, %197 : vector<8x64xf32>
      %c0_110 = arith.constant 0 : index
      %c0_111 = arith.constant 0 : index
      %199 = vector.load %arg9[%c0_110, %c0_111] : memref<1x64xf32, #tpu.memory_space<vmem>>, vector<1x64xf32>
      %200 = vector.broadcast %199 : vector<1x64xf32> to vector<8x64xf32>
      %201 = arith.mulf %198, %200 : vector<8x64xf32>
      %c0_112 = arith.constant 0 : index
      %c0_113 = arith.constant 0 : index
      %202 = vector.load %arg10[%c0_112, %c0_113] : memref<1x64xf32, #tpu.memory_space<vmem>>, vector<1x64xf32>
      %203 = vector.broadcast %202 : vector<1x64xf32> to vector<8x64xf32>
      %204 = arith.addf %201, %203 : vector<8x64xf32>
      %c0_114 = arith.constant 0 : index
      %c0_115 = arith.constant 0 : index
      %205 = vector.load %arg5[%c0_114, %c0_115] : memref<64x64xf32, #tpu.memory_space<vmem>>, vector<64x64xf32>
      %cst_116 = arith.constant dense<0.000000e+00> : vector<8x64xf32>
      %206 = tpu.matmul %204, %205, %cst_116 {dimension_numbers = #tpu.dot_dimension_numbers<[1], [0], [0], [1], [0, 0, 1, 1], [], []>} : vector<8x64xf32>, vector<64x64xf32>, vector<8x64xf32> -> vector<8x64xf32>
      %c0_117 = arith.constant 0 : index
      %c0_118 = arith.constant 0 : index
      %207 = vector.load %arg13[%c0_117, %c0_118] : memref<8x64xf32, #tpu.memory_space<vmem>>, vector<8x64xf32>
      tpu.vector_store %arg13[%c0_117, %c0_118], %206 {strides = array<i32>} : memref<8x64xf32, #tpu.memory_space<vmem>>, vector<8x64xf32>,
      %c0_119 = arith.constant 0 : index
      %c0_120 = arith.constant 0 : index
      %208 = vector.load %arg6[%c0_119, %c0_120] : memref<64x64xf32, #tpu.memory_space<vmem>>, vector<64x64xf32>
      %cst_121 = arith.constant dense<0.000000e+00> : vector<8x64xf32>
      %209 = tpu.matmul %204, %208, %cst_121 {dimension_numbers = #tpu.dot_dimension_numbers<[1], [0], [0], [1], [0, 0, 1, 1], [], []>} : vector<8x64xf32>, vector<64x64xf32>, vector<8x64xf32> -> vector<8x64xf32>
      %c0_122 = arith.constant 0 : index
      %c0_123 = arith.constant 0 : index
      %210 = vector.load %arg14[%c0_122, %c0_123] : memref<8x64xf32, #tpu.memory_space<vmem>>, vector<8x64xf32>
      tpu.vector_store %arg14[%c0_122, %c0_123], %209 {strides = array<i32>} : memref<8x64xf32, #tpu.memory_space<vmem>>, vector<8x64xf32>,
    } else {
    }
    %c0 = arith.constant 0 : index
    %c0_1 = arith.constant 0 : index
    %c0_2 = arith.constant 0 : index
    %3 = vector.load %arg2[%c0, %c0_1, %c0_2] : memref<1x8x64xf32, #tpu.memory_space<vmem>>, vector<1x8x64xf32>
    %4 = vector.shape_cast %3 : vector<1x8x64xf32> to vector<8x64xf32>
    %cst = arith.constant dense<0.000000e+00> : vector<8xf32>
    %5 = vector.multi_reduction <add>, %4, %cst [1] : vector<8x64xf32> to vector<8xf32>
    %6 = vector.shape_cast %5 : vector<8xf32> to vector<8x1xf32>
    %cst_3 = arith.constant 6.400000e+01 : f32
    %7 = vector.broadcast %cst_3 : f32 to vector<8x1xf32>
    %8 = arith.divf %6, %7 : vector<8x1xf32>
    %9 = vector.broadcast %8 : vector<8x1xf32> to vector<8x64xf32>
    %10 = arith.subf %4, %9 : vector<8x64xf32>
    %11 = arith.mulf %10, %10 : vector<8x64xf32>
    %cst_4 = arith.constant dense<0.000000e+00> : vector<8xf32>
    %12 = vector.multi_reduction <add>, %11, %cst_4 [1] : vector<8x64xf32> to vector<8xf32>
    %13 = vector.shape_cast %12 : vector<8xf32> to vector<8x1xf32>
    %cst_5 = arith.constant 6.400000e+01 : f32
    %14 = vector.broadcast %cst_5 : f32 to vector<8x1xf32>
    %15 = arith.divf %13, %14 : vector<8x1xf32>
    %cst_6 = arith.constant 9.99999974E-6 : f32
    %16 = vector.broadcast %cst_6 : f32 to vector<8x1xf32>
    %17 = arith.addf %15, %16 : vector<8x1xf32>
    %18 = math.rsqrt %17 : vector<8x1xf32>
    %19 = vector.broadcast %18 : vector<8x1xf32> to vector<8x64xf32>
    %20 = arith.mulf %10, %19 : vector<8x64xf32>
    %c0_7 = arith.constant 0 : index
    %c0_8 = arith.constant 0 : index
    %21 = vector.load %arg9[%c0_7, %c0_8] : memref<1x64xf32, #tpu.memory_space<vmem>>, vector<1x64xf32>
    %22 = vector.broadcast %21 : vector<1x64xf32> to vector<8x64xf32>
    %23 = arith.mulf %20, %22 : vector<8x64xf32>
    %c0_9 = arith.constant 0 : index
    %c0_10 = arith.constant 0 : index
    %24 = vector.load %arg10[%c0_9, %c0_10] : memref<1x64xf32, #tpu.memory_space<vmem>>, vector<1x64xf32>
    %25 = vector.broadcast %24 : vector<1x64xf32> to vector<8x64xf32>
    %26 = arith.addf %23, %25 : vector<8x64xf32>
    %c0_11 = arith.constant 0 : index
    %c0_12 = arith.constant 0 : index
    %27 = vector.load %arg4[%c0_11, %c0_12] : memref<64x64xf32, #tpu.memory_space<vmem>>, vector<64x64xf32>
    %cst_13 = arith.constant dense<0.000000e+00> : vector<8x64xf32>
    %28 = tpu.matmul %26, %27, %cst_13 {dimension_numbers = #tpu.dot_dimension_numbers<[1], [0], [0], [1], [0, 0, 1, 1], [], []>} : vector<8x64xf32>, vector<64x64xf32>, vector<8x64xf32> -> vector<8x64xf32>
    %cst_14 = arith.constant 0.000000e+00 : f32
    %29 = vector.broadcast %cst_14 : f32 to vector<8x8xf32>
    %30 = vector.extract_strided_slice %28 {offsets = [0, 0], sizes = [8, 8], strides = [1, 1]} : vector<8x64xf32> to vector<8x8xf32>
    %c0_15 = arith.constant 0 : index
    %c0_16 = arith.constant 0 : index
    %31 = vector.load %arg13[%c0_15, %c0_16] : memref<8x64xf32, #tpu.memory_space<vmem>>, vector<8x8xf32>
    %cst_17 = arith.constant dense<0.000000e+00> : vector<8x8xf32>
    %32 = tpu.matmul %30, %31, %cst_17 {dimension_numbers = #tpu.dot_dimension_numbers<[1], [1], [0], [0], [0, 0, 1, 0], [], []>} : vector<8x8xf32>, vector<8x8xf32>, vector<8x8xf32> -> vector<8x8xf32>
    %cst_18 = arith.constant dense<0xFF800000> : vector<8xf32>
    %33 = vector.multi_reduction <maximumf>, %32, %cst_18 [1] : vector<8x8xf32> to vector<8xf32>
    %34 = vector.shape_cast %33 : vector<8xf32> to vector<8x1xf32>
    %35 = vector.broadcast %34 : vector<8x1xf32> to vector<8x8xf32>
    %36 = arith.subf %32, %35 : vector<8x8xf32>
    %37 = math.exp %36 : vector<8x8xf32>
    %cst_19 = arith.constant dense<0.000000e+00> : vector<8xf32>
    %38 = vector.multi_reduction <add>, %37, %cst_19 [1] : vector<8x8xf32> to vector<8xf32>
    %39 = vector.shape_cast %38 : vector<8xf32> to vector<8x1xf32>
    %40 = tpu.reciprocal %39 : vector<8x1xf32> -> vector<8x1xf32>
    %41 = vector.broadcast %40 : vector<8x1xf32> to vector<8x8xf32>
    %42 = arith.mulf %37, %41 : vector<8x8xf32>
    %43 = arith.addf %29, %42 : vector<8x8xf32>
    %c0_20 = arith.constant 0 : index
    %c0_21 = arith.constant 0 : index
    %44 = vector.load %arg14[%c0_20, %c0_21] : memref<8x64xf32, #tpu.memory_space<vmem>>, vector<8x8xf32>
    %cst_22 = arith.constant dense<0.000000e+00> : vector<8x8xf32>
    %45 = tpu.matmul %42, %44, %cst_22 {dimension_numbers = #tpu.dot_dimension_numbers<[1], [0], [0], [1], [0, 0, 1, 1], [], []>} : vector<8x8xf32>, vector<8x8xf32>, vector<8x8xf32> -> vector<8x8xf32>
    %c0_23 = arith.constant 0 : index
    %c0_24 = arith.constant 0 : index
    %46 = vector.load %arg15[%c0_23, %c0_24] : memref<8x64xf32, #tpu.memory_space<vmem>>, vector<8x8xf32>
    tpu.vector_store %arg15[%c0_23, %c0_24], %45 {strides = array<i32>} : memref<8x64xf32, #tpu.memory_space<vmem>>, vector<8x8xf32>,
    %47 = vector.extract_strided_slice %28 {offsets = [0, 8], sizes = [8, 8], strides = [1, 1]} : vector<8x64xf32> to vector<8x8xf32>
    %c0_25 = arith.constant 0 : index
    %c8 = arith.constant 8 : index
    %48 = vector.load %arg13[%c0_25, %c8] : memref<8x64xf32, #tpu.memory_space<vmem>>, vector<8x8xf32>
    %cst_26 = arith.constant dense<0.000000e+00> : vector<8x8xf32>
    %49 = tpu.matmul %47, %48, %cst_26 {dimension_numbers = #tpu.dot_dimension_numbers<[1], [1], [0], [0], [0, 0, 1, 0], [], []>} : vector<8x8xf32>, vector<8x8xf32>, vector<8x8xf32> -> vector<8x8xf32>
    %cst_27 = arith.constant dense<0xFF800000> : vector<8xf32>
    %50 = vector.multi_reduction <maximumf>, %49, %cst_27 [1] : vector<8x8xf32> to vector<8xf32>
    %51 = vector.shape_cast %50 : vector<8xf32> to vector<8x1xf32>
    %52 = vector.broadcast %51 : vector<8x1xf32> to vector<8x8xf32>
    %53 = arith.subf %49, %52 : vector<8x8xf32>
    %54 = math.exp %53 : vector<8x8xf32>
    %cst_28 = arith.constant dense<0.000000e+00> : vector<8xf32>
    %55 = vector.multi_reduction <add>, %54, %cst_28 [1] : vector<8x8xf32> to vector<8xf32>
    %56 = vector.shape_cast %55 : vector<8xf32> to vector<8x1xf32>
    %57 = tpu.reciprocal %56 : vector<8x1xf32> -> vector<8x1xf32>
    %58 = vector.broadcast %57 : vector<8x1xf32> to vector<8x8xf32>
    %59 = arith.mulf %54, %58 : vector<8x8xf32>
    %60 = arith.addf %43, %59 : vector<8x8xf32>
    %c0_29 = arith.constant 0 : index
    %c8_30 = arith.constant 8 : index
    %61 = vector.load %arg14[%c0_29, %c8_30] : memref<8x64xf32, #tpu.memory_space<vmem>>, vector<8x8xf32>
    %cst_31 = arith.constant dense<0.000000e+00> : vector<8x8xf32>
    %62 = tpu.matmul %59, %61, %cst_31 {dimension_numbers = #tpu.dot_dimension_numbers<[1], [0], [0], [1], [0, 0, 1, 1], [], []>} : vector<8x8xf32>, vector<8x8xf32>, vector<8x8xf32> -> vector<8x8xf32>
    %c0_32 = arith.constant 0 : index
    %c8_33 = arith.constant 8 : index
    %63 = vector.load %arg15[%c0_32, %c8_33] : memref<8x64xf32, #tpu.memory_space<vmem>>, vector<8x8xf32>
    tpu.vector_store %arg15[%c0_32, %c8_33], %62 {strides = array<i32>} : memref<8x64xf32, #tpu.memory_space<vmem>>, vector<8x8xf32>,
    %64 = vector.extract_strided_slice %28 {offsets = [0, 16], sizes = [8, 8], strides = [1, 1]} : vector<8x64xf32> to vector<8x8xf32>
    %c0_34 = arith.constant 0 : index
    %c16 = arith.constant 16 : index
    %65 = vector.load %arg13[%c0_34, %c16] : memref<8x64xf32, #tpu.memory_space<vmem>>, vector<8x8xf32>
    %cst_35 = arith.constant dense<0.000000e+00> : vector<8x8xf32>
    %66 = tpu.matmul %64, %65, %cst_35 {dimension_numbers = #tpu.dot_dimension_numbers<[1], [1], [0], [0], [0, 0, 1, 0], [], []>} : vector<8x8xf32>, vector<8x8xf32>, vector<8x8xf32> -> vector<8x8xf32>
    %cst_36 = arith.constant dense<0xFF800000> : vector<8xf32>
    %67 = vector.multi_reduction <maximumf>, %66, %cst_36 [1] : vector<8x8xf32> to vector<8xf32>
    %68 = vector.shape_cast %67 : vector<8xf32> to vector<8x1xf32>
    %69 = vector.broadcast %68 : vector<8x1xf32> to vector<8x8xf32>
    %70 = arith.subf %66, %69 : vector<8x8xf32>
    %71 = math.exp %70 : vector<8x8xf32>
    %cst_37 = arith.constant dense<0.000000e+00> : vector<8xf32>
    %72 = vector.multi_reduction <add>, %71, %cst_37 [1] : vector<8x8xf32> to vector<8xf32>
    %73 = vector.shape_cast %72 : vector<8xf32> to vector<8x1xf32>
    %74 = tpu.reciprocal %73 : vector<8x1xf32> -> vector<8x1xf32>
    %75 = vector.broadcast %74 : vector<8x1xf32> to vector<8x8xf32>
    %76 = arith.mulf %71, %75 : vector<8x8xf32>
    %77 = arith.addf %60, %76 : vector<8x8xf32>
    %c0_38 = arith.constant 0 : index
    %c16_39 = arith.constant 16 : index
    %78 = vector.load %arg14[%c0_38, %c16_39] : memref<8x64xf32, #tpu.memory_space<vmem>>, vector<8x8xf32>
    %cst_40 = arith.constant dense<0.000000e+00> : vector<8x8xf32>
    %79 = tpu.matmul %76, %78, %cst_40 {dimension_numbers = #tpu.dot_dimension_numbers<[1], [0], [0], [1], [0, 0, 1, 1], [], []>} : vector<8x8xf32>, vector<8x8xf32>, vector<8x8xf32> -> vector<8x8xf32>
    %c0_41 = arith.constant 0 : index
    %c16_42 = arith.constant 16 : index
    %80 = vector.load %arg15[%c0_41, %c16_42] : memref<8x64xf32, #tpu.memory_space<vmem>>, vector<8x8xf32>
    tpu.vector_store %arg15[%c0_41, %c16_42], %79 {strides = array<i32>} : memref<8x64xf32, #tpu.memory_space<vmem>>, vector<8x8xf32>,
    %81 = vector.extract_strided_slice %28 {offsets = [0, 24], sizes = [8, 8], strides = [1, 1]} : vector<8x64xf32> to vector<8x8xf32>
    %c0_43 = arith.constant 0 : index
    %c24 = arith.constant 24 : index
    %82 = vector.load %arg13[%c0_43, %c24] : memref<8x64xf32, #tpu.memory_space<vmem>>, vector<8x8xf32>
    %cst_44 = arith.constant dense<0.000000e+00> : vector<8x8xf32>
    %83 = tpu.matmul %81, %82, %cst_44 {dimension_numbers = #tpu.dot_dimension_numbers<[1], [1], [0], [0], [0, 0, 1, 0], [], []>} : vector<8x8xf32>, vector<8x8xf32>, vector<8x8xf32> -> vector<8x8xf32>
    %cst_45 = arith.constant dense<0xFF800000> : vector<8xf32>
    %84 = vector.multi_reduction <maximumf>, %83, %cst_45 [1] : vector<8x8xf32> to vector<8xf32>
    %85 = vector.shape_cast %84 : vector<8xf32> to vector<8x1xf32>
    %86 = vector.broadcast %85 : vector<8x1xf32> to vector<8x8xf32>
    %87 = arith.subf %83, %86 : vector<8x8xf32>
    %88 = math.exp %87 : vector<8x8xf32>
    %cst_46 = arith.constant dense<0.000000e+00> : vector<8xf32>
    %89 = vector.multi_reduction <add>, %88, %cst_46 [1] : vector<8x8xf32> to vector<8xf32>
    %90 = vector.shape_cast %89 : vector<8xf32> to vector<8x1xf32>
    %91 = tpu.reciprocal %90 : vector<8x1xf32> -> vector<8x1xf32>
    %92 = vector.broadcast %91 : vector<8x1xf32> to vector<8x8xf32>
    %93 = arith.mulf %88, %92 : vector<8x8xf32>
    %94 = arith.addf %77, %93 : vector<8x8xf32>
    %c0_47 = arith.constant 0 : index
    %c24_48 = arith.constant 24 : index
    %95 = vector.load %arg14[%c0_47, %c24_48] : memref<8x64xf32, #tpu.memory_space<vmem>>, vector<8x8xf32>
    %cst_49 = arith.constant dense<0.000000e+00> : vector<8x8xf32>
    %96 = tpu.matmul %93, %95, %cst_49 {dimension_numbers = #tpu.dot_dimension_numbers<[1], [0], [0], [1], [0, 0, 1, 1], [], []>} : vector<8x8xf32>, vector<8x8xf32>, vector<8x8xf32> -> vector<8x8xf32>
    %c0_50 = arith.constant 0 : index
    %c24_51 = arith.constant 24 : index
    %97 = vector.load %arg15[%c0_50, %c24_51] : memref<8x64xf32, #tpu.memory_space<vmem>>, vector<8x8xf32>
    tpu.vector_store %arg15[%c0_50, %c24_51], %96 {strides = array<i32>} : memref<8x64xf32, #tpu.memory_space<vmem>>, vector<8x8xf32>,
    %98 = vector.extract_strided_slice %28 {offsets = [0, 32], sizes = [8, 8], strides = [1, 1]} : vector<8x64xf32> to vector<8x8xf32>
    %c0_52 = arith.constant 0 : index
    %c32 = arith.constant 32 : index
    %99 = vector.load %arg13[%c0_52, %c32] : memref<8x64xf32, #tpu.memory_space<vmem>>, vector<8x8xf32>
    %cst_53 = arith.constant dense<0.000000e+00> : vector<8x8xf32>
    %100 = tpu.matmul %98, %99, %cst_53 {dimension_numbers = #tpu.dot_dimension_numbers<[1], [1], [0], [0], [0, 0, 1, 0], [], []>} : vector<8x8xf32>, vector<8x8xf32>, vector<8x8xf32> -> vector<8x8xf32>
    %cst_54 = arith.constant dense<0xFF800000> : vector<8xf32>
    %101 = vector.multi_reduction <maximumf>, %100, %cst_54 [1] : vector<8x8xf32> to vector<8xf32>
    %102 = vector.shape_cast %101 : vector<8xf32> to vector<8x1xf32>
    %103 = vector.broadcast %102 : vector<8x1xf32> to vector<8x8xf32>
    %104 = arith.subf %100, %103 : vector<8x8xf32>
    %105 = math.exp %104 : vector<8x8xf32>
    %cst_55 = arith.constant dense<0.000000e+00> : vector<8xf32>
    %106 = vector.multi_reduction <add>, %105, %cst_55 [1] : vector<8x8xf32> to vector<8xf32>
    %107 = vector.shape_cast %106 : vector<8xf32> to vector<8x1xf32>
    %108 = tpu.reciprocal %107 : vector<8x1xf32> -> vector<8x1xf32>
    %109 = vector.broadcast %108 : vector<8x1xf32> to vector<8x8xf32>
    %110 = arith.mulf %105, %109 : vector<8x8xf32>
    %111 = arith.addf %94, %110 : vector<8x8xf32>
    %c0_56 = arith.constant 0 : index
    %c32_57 = arith.constant 32 : index
    %112 = vector.load %arg14[%c0_56, %c32_57] : memref<8x64xf32, #tpu.memory_space<vmem>>, vector<8x8xf32>
    %cst_58 = arith.constant dense<0.000000e+00> : vector<8x8xf32>
    %113 = tpu.matmul %110, %112, %cst_58 {dimension_numbers = #tpu.dot_dimension_numbers<[1], [0], [0], [1], [0, 0, 1, 1], [], []>} : vector<8x8xf32>, vector<8x8xf32>, vector<8x8xf32> -> vector<8x8xf32>
    %c0_59 = arith.constant 0 : index
    %c32_60 = arith.constant 32 : index
    %114 = vector.load %arg15[%c0_59, %c32_60] : memref<8x64xf32, #tpu.memory_space<vmem>>, vector<8x8xf32>
    tpu.vector_store %arg15[%c0_59, %c32_60], %113 {strides = array<i32>} : memref<8x64xf32, #tpu.memory_space<vmem>>, vector<8x8xf32>,
    %115 = vector.extract_strided_slice %28 {offsets = [0, 40], sizes = [8, 8], strides = [1, 1]} : vector<8x64xf32> to vector<8x8xf32>
    %c0_61 = arith.constant 0 : index
    %c40 = arith.constant 40 : index
    %116 = vector.load %arg13[%c0_61, %c40] : memref<8x64xf32, #tpu.memory_space<vmem>>, vector<8x8xf32>
    %cst_62 = arith.constant dense<0.000000e+00> : vector<8x8xf32>
    %117 = tpu.matmul %115, %116, %cst_62 {dimension_numbers = #tpu.dot_dimension_numbers<[1], [1], [0], [0], [0, 0, 1, 0], [], []>} : vector<8x8xf32>, vector<8x8xf32>, vector<8x8xf32> -> vector<8x8xf32>
    %cst_63 = arith.constant dense<0xFF800000> : vector<8xf32>
    %118 = vector.multi_reduction <maximumf>, %117, %cst_63 [1] : vector<8x8xf32> to vector<8xf32>
    %119 = vector.shape_cast %118 : vector<8xf32> to vector<8x1xf32>
    %120 = vector.broadcast %119 : vector<8x1xf32> to vector<8x8xf32>
    %121 = arith.subf %117, %120 : vector<8x8xf32>
    %122 = math.exp %121 : vector<8x8xf32>
    %cst_64 = arith.constant dense<0.000000e+00> : vector<8xf32>
    %123 = vector.multi_reduction <add>, %122, %cst_64 [1] : vector<8x8xf32> to vector<8xf32>
    %124 = vector.shape_cast %123 : vector<8xf32> to vector<8x1xf32>
    %125 = tpu.reciprocal %124 : vector<8x1xf32> -> vector<8x1xf32>
    %126 = vector.broadcast %125 : vector<8x1xf32> to vector<8x8xf32>
    %127 = arith.mulf %122, %126 : vector<8x8xf32>
    %128 = arith.addf %111, %127 : vector<8x8xf32>
    %c0_65 = arith.constant 0 : index
    %c40_66 = arith.constant 40 : index
    %129 = vector.load %arg14[%c0_65, %c40_66] : memref<8x64xf32, #tpu.memory_space<vmem>>, vector<8x8xf32>
    %cst_67 = arith.constant dense<0.000000e+00> : vector<8x8xf32>
    %130 = tpu.matmul %127, %129, %cst_67 {dimension_numbers = #tpu.dot_dimension_numbers<[1], [0], [0], [1], [0, 0, 1, 1], [], []>} : vector<8x8xf32>, vector<8x8xf32>, vector<8x8xf32> -> vector<8x8xf32>
    %c0_68 = arith.constant 0 : index
    %c40_69 = arith.constant 40 : index
    %131 = vector.load %arg15[%c0_68, %c40_69] : memref<8x64xf32, #tpu.memory_space<vmem>>, vector<8x8xf32>
    tpu.vector_store %arg15[%c0_68, %c40_69], %130 {strides = array<i32>} : memref<8x64xf32, #tpu.memory_space<vmem>>, vector<8x8xf32>,
    %132 = vector.extract_strided_slice %28 {offsets = [0, 48], sizes = [8, 8], strides = [1, 1]} : vector<8x64xf32> to vector<8x8xf32>
    %c0_70 = arith.constant 0 : index
    %c48 = arith.constant 48 : index
    %133 = vector.load %arg13[%c0_70, %c48] : memref<8x64xf32, #tpu.memory_space<vmem>>, vector<8x8xf32>
    %cst_71 = arith.constant dense<0.000000e+00> : vector<8x8xf32>
    %134 = tpu.matmul %132, %133, %cst_71 {dimension_numbers = #tpu.dot_dimension_numbers<[1], [1], [0], [0], [0, 0, 1, 0], [], []>} : vector<8x8xf32>, vector<8x8xf32>, vector<8x8xf32> -> vector<8x8xf32>
    %cst_72 = arith.constant dense<0xFF800000> : vector<8xf32>
    %135 = vector.multi_reduction <maximumf>, %134, %cst_72 [1] : vector<8x8xf32> to vector<8xf32>
    %136 = vector.shape_cast %135 : vector<8xf32> to vector<8x1xf32>
    %137 = vector.broadcast %136 : vector<8x1xf32> to vector<8x8xf32>
    %138 = arith.subf %134, %137 : vector<8x8xf32>
    %139 = math.exp %138 : vector<8x8xf32>
    %cst_73 = arith.constant dense<0.000000e+00> : vector<8xf32>
    %140 = vector.multi_reduction <add>, %139, %cst_73 [1] : vector<8x8xf32> to vector<8xf32>
    %141 = vector.shape_cast %140 : vector<8xf32> to vector<8x1xf32>
    %142 = tpu.reciprocal %141 : vector<8x1xf32> -> vector<8x1xf32>
    %143 = vector.broadcast %142 : vector<8x1xf32> to vector<8x8xf32>
    %144 = arith.mulf %139, %143 : vector<8x8xf32>
    %145 = arith.addf %128, %144 : vector<8x8xf32>
    %c0_74 = arith.constant 0 : index
    %c48_75 = arith.constant 48 : index
    %146 = vector.load %arg14[%c0_74, %c48_75] : memref<8x64xf32, #tpu.memory_space<vmem>>, vector<8x8xf32>
    %cst_76 = arith.constant dense<0.000000e+00> : vector<8x8xf32>
    %147 = tpu.matmul %144, %146, %cst_76 {dimension_numbers = #tpu.dot_dimension_numbers<[1], [0], [0], [1], [0, 0, 1, 1], [], []>} : vector<8x8xf32>, vector<8x8xf32>, vector<8x8xf32> -> vector<8x8xf32>
    %c0_77 = arith.constant 0 : index
    %c48_78 = arith.constant 48 : index
    %148 = vector.load %arg15[%c0_77, %c48_78] : memref<8x64xf32, #tpu.memory_space<vmem>>, vector<8x8xf32>
    tpu.vector_store %arg15[%c0_77, %c48_78], %147 {strides = array<i32>} : memref<8x64xf32, #tpu.memory_space<vmem>>, vector<8x8xf32>,
    %149 = vector.extract_strided_slice %28 {offsets = [0, 56], sizes = [8, 8], strides = [1, 1]} : vector<8x64xf32> to vector<8x8xf32>
    %c0_79 = arith.constant 0 : index
    %c56 = arith.constant 56 : index
    %150 = vector.load %arg13[%c0_79, %c56] : memref<8x64xf32, #tpu.memory_space<vmem>>, vector<8x8xf32>
    %cst_80 = arith.constant dense<0.000000e+00> : vector<8x8xf32>
    %151 = tpu.matmul %149, %150, %cst_80 {dimension_numbers = #tpu.dot_dimension_numbers<[1], [1], [0], [0], [0, 0, 1, 0], [], []>} : vector<8x8xf32>, vector<8x8xf32>, vector<8x8xf32> -> vector<8x8xf32>
    %cst_81 = arith.constant dense<0xFF800000> : vector<8xf32>
    %152 = vector.multi_reduction <maximumf>, %151, %cst_81 [1] : vector<8x8xf32> to vector<8xf32>
    %153 = vector.shape_cast %152 : vector<8xf32> to vector<8x1xf32>
    %154 = vector.broadcast %153 : vector<8x1xf32> to vector<8x8xf32>
    %155 = arith.subf %151, %154 : vector<8x8xf32>
    %156 = math.exp %155 : vector<8x8xf32>
    %cst_82 = arith.constant dense<0.000000e+00> : vector<8xf32>
    %157 = vector.multi_reduction <add>, %156, %cst_82 [1] : vector<8x8xf32> to vector<8xf32>
    %158 = vector.shape_cast %157 : vector<8xf32> to vector<8x1xf32>
    %159 = tpu.reciprocal %158 : vector<8x1xf32> -> vector<8x1xf32>
    %160 = vector.broadcast %159 : vector<8x1xf32> to vector<8x8xf32>
    %161 = arith.mulf %156, %160 : vector<8x8xf32>
    %162 = arith.addf %145, %161 : vector<8x8xf32>
    %c0_83 = arith.constant 0 : index
    %c56_84 = arith.constant 56 : index
    %163 = vector.load %arg14[%c0_83, %c56_84] : memref<8x64xf32, #tpu.memory_space<vmem>>, vector<8x8xf32>
    %cst_85 = arith.constant dense<0.000000e+00> : vector<8x8xf32>
    %164 = tpu.matmul %161, %163, %cst_85 {dimension_numbers = #tpu.dot_dimension_numbers<[1], [0], [0], [1], [0, 0, 1, 1], [], []>} : vector<8x8xf32>, vector<8x8xf32>, vector<8x8xf32> -> vector<8x8xf32>
    %c0_86 = arith.constant 0 : index
    %c56_87 = arith.constant 56 : index
    %165 = vector.load %arg15[%c0_86, %c56_87] : memref<8x64xf32, #tpu.memory_space<vmem>>, vector<8x8xf32>
    tpu.vector_store %arg15[%c0_86, %c56_87], %164 {strides = array<i32>} : memref<8x64xf32, #tpu.memory_space<vmem>>, vector<8x8xf32>,
    %c0_88 = arith.constant 0 : index
    %c0_89 = arith.constant 0 : index
    %166 = vector.load %arg15[%c0_88, %c0_89] : memref<8x64xf32, #tpu.memory_space<vmem>>, vector<8x64xf32>
    %c0_90 = arith.constant 0 : index
    %c0_91 = arith.constant 0 : index
    %167 = vector.load %arg7[%c0_90, %c0_91] : memref<64x64xf32, #tpu.memory_space<vmem>>, vector<64x64xf32>
    %cst_92 = arith.constant dense<0.000000e+00> : vector<8x64xf32>
    %168 = tpu.matmul %166, %167, %cst_92 {dimension_numbers = #tpu.dot_dimension_numbers<[1], [0], [0], [1], [0, 0, 1, 1], [], []>} : vector<8x64xf32>, vector<64x64xf32>, vector<8x64xf32> -> vector<8x64xf32>
    %c0_93 = arith.constant 0 : index
    %c0_94 = arith.constant 0 : index
    %169 = vector.load %arg8[%c0_93, %c0_94] : memref<1x64xf32, #tpu.memory_space<vmem>>, vector<1x64xf32>
    %170 = vector.broadcast %169 : vector<1x64xf32> to vector<8x64xf32>
    %171 = arith.addf %168, %170 : vector<8x64xf32>
    %172 = arith.addf %4, %171 : vector<8x64xf32>
    %c0_95 = arith.constant 0 : index
    %c0_96 = arith.constant 0 : index
    %c0_97 = arith.constant 0 : index
    %173 = vector.load %arg11[%c0_95, %c0_96, %c0_97] : memref<1x8x64xf32, #tpu.memory_space<vmem>>, vector<1x8x64xf32>
    %174 = vector.shape_cast %173 : vector<1x8x64xf32> to vector<8x64xf32>
    %175 = vector.shape_cast %172 : vector<8x64xf32> to vector<1x8x64xf32>
    tpu.vector_store %arg11[%c0_95, %c0_96, %c0_97], %175 {strides = array<i32>} : memref<1x8x64xf32, #tpu.memory_space<vmem>>, vector<1x8x64xf32>,
    %cst_98 = arith.constant 1.250000e-01 : f32
    %176 = vector.broadcast %cst_98 : f32 to vector<8x8xf32>
    %177 = arith.mulf %162, %176 : vector<8x8xf32>
    %c0_99 = arith.constant 0 : index
    %c0_100 = arith.constant 0 : index
    %c0_101 = arith.constant 0 : index
    %178 = vector.load %arg12[%c0_99, %c0_100, %c0_101] : memref<1x8x8xf32, #tpu.memory_space<vmem>>, vector<1x8x8xf32>
    %179 = vector.shape_cast %178 : vector<1x8x8xf32> to vector<8x8xf32>
    %180 = vector.shape_cast %177 : vector<8x8xf32> to vector<1x8x8xf32>
    tpu.vector_store %arg12[%c0_99, %c0_100, %c0_101], %180 {strides = array<i32>} : memref<1x8x8xf32, #tpu.memory_space<vmem>>, vector<1x8x8xf32>,
    return
  }
  func.func @transform_0(%arg0: i32, %arg1: i32) -> (i32, i32, i32) {
    %c0_i32 = arith.constant 0 : i32
    %c0_i32_0 = arith.constant 0 : i32
    return %arg0, %arg1, %c0_i32 : i32, i32, i32
  }
  func.func @transform_1(%arg0: i32, %arg1: i32) -> (i32, i32, i32) {
    %c0_i32 = arith.constant 0 : i32
    %c0_i32_0 = arith.constant 0 : i32
    %c0_i32_1 = arith.constant 0 : i32
    return %arg0, %c0_i32, %c0_i32_0 : i32, i32, i32
  }
  func.func @transform_2(%arg0: i32, %arg1: i32) -> (i32, i32) {
    %c0_i32 = arith.constant 0 : i32
    %c0_i32_0 = arith.constant 0 : i32
    %c0_i32_1 = arith.constant 0 : i32
    return %c0_i32, %c0_i32_0 : i32, i32
  }
  func.func @transform_3(%arg0: i32, %arg1: i32) -> (i32, i32) {
    %c0_i32 = arith.constant 0 : i32
    %c0_i32_0 = arith.constant 0 : i32
    %c0_i32_1 = arith.constant 0 : i32
    return %c0_i32, %c0_i32_0 : i32, i32
  }
  func.func @transform_4(%arg0: i32, %arg1: i32) -> (i32, i32) {
    %c0_i32 = arith.constant 0 : i32
    %c0_i32_0 = arith.constant 0 : i32
    %c0_i32_1 = arith.constant 0 : i32
    return %c0_i32, %c0_i32_0 : i32, i32
  }
  func.func @transform_5(%arg0: i32, %arg1: i32) -> (i32, i32) {
    %c0_i32 = arith.constant 0 : i32
    %c0_i32_0 = arith.constant 0 : i32
    %c0_i32_1 = arith.constant 0 : i32
    return %c0_i32, %c0_i32_0 : i32, i32
  }
  func.func @transform_6(%arg0: i32, %arg1: i32) -> (i32, i32) {
    %c0_i32 = arith.constant 0 : i32
    %c0_i32_0 = arith.constant 0 : i32
    %c0_i32_1 = arith.constant 0 : i32
    return %c0_i32, %c0_i32_0 : i32, i32
  }
  func.func @transform_7(%arg0: i32, %arg1: i32) -> (i32, i32) {
    %c0_i32 = arith.constant 0 : i32
    %c0_i32_0 = arith.constant 0 : i32
    %c0_i32_1 = arith.constant 0 : i32
    return %c0_i32, %c0_i32_0 : i32, i32
  }
  func.func @transform_8(%arg0: i32, %arg1: i32) -> (i32, i32) {
    %c0_i32 = arith.constant 0 : i32
    %c0_i32_0 = arith.constant 0 : i32
    %c0_i32_1 = arith.constant 0 : i32
    return %c0_i32, %c0_i32_0 : i32, i32
  }
  func.func @transform_9(%arg0: i32, %arg1: i32) -> (i32, i32, i32) {
    %c0_i32 = arith.constant 0 : i32
    %c0_i32_0 = arith.constant 0 : i32
    return %arg0, %arg1, %c0_i32 : i32, i32, i32
  }
  func.func @transform_10(%arg0: i32, %arg1: i32) -> (i32, i32, i32) {
    %c0_i32 = arith.constant 0 : i32
    %c0_i32_0 = arith.constant 0 : i32
    return %arg0, %arg1, %c0_i32 : i32, i32, i32
  }
}

</mosaic_0001>

<bundles_post_ra>
// kernel: tpu_custom_call.1
= control target key start
LH: loop header
LB: loop body
LE: loop exit
PB: predicated region body
PF: predicated region fallthrough
CT: control target
= control target key end

     0   :  { %6 = vsyncpa [#allocation3], 0  ;;  %s124_s0 = inlined_call_operand.hbm [shape: f32[8,128], index: 0, kind: input, shape index: {}]   ;;  %s125_s1 = inlined_call_operand.hbm [shape: f32[8,128], index: 1, kind: output, shape index: {}]  }
   0x1   :  { %7 = vsyncpa [#allocation4], 0  ;;  %s88_s6 = smov [#allocation2]   ;;  %s40_s10 = scalar_lea.hbm %s124_s0, 128 }
   0x2   :  { %s14_s7 = sshll.u32 %s88_s6, 4  ;;  %p41_p0 = scmp.ne.s32.totalorder %s124_s0, %s40_s10  ;;  %s15_s7 = int_to_ptr.vmem [resolvable:$true] %s14_s7 }
   0x3   :  { %p44_p1 = scmp.lt.u32.totalorder %s40_s10, %s124_s0 }
   0x5   :  { %p46_p2 = pnand %p44_p1, %p41_p0 }
   0x7   :  { %49 = shalt.err (!%p46_p2)
}
   0x8   :  { %s50_s15 = scalar_lea.vmem %s15_s7, 128  ;;  %p55_p4 = scmp.lt.s32.totalorder %s15_s7, %s15_s7 }
   0x9   :  { %p51_p3 = scmp.ne.s32.totalorder %s15_s7, %s50_s15  ;;  %p56_p5 = scmp.lt.s32.totalorder %s50_s15, %s50_s15 }
   0xb   :  { %p57_p6 = por %p56_p5, %p55_p4 }
   0xd   :  { %p58_p7 = pnand %p57_p6, %p51_p3 }
   0xf   :  { %61 = shalt.err (!%p58_p7)
}
  0x10   :  { %17 = dma.hbm_to_vmem [thread:$0]  %s124_s0, 128, %s15_s7, [#allocation3]  }
  0x11   :  { %84 = dma.done.wait [#allocation3], 128  }
  0x12   :  { %85 = vsyncadd [#allocation3], 4294967168  ;;  %s89_s18 = smov [#allocation5]   ;;  %v21_v0 = vld [vmem:[#allocation2] sm:$0xff] }
  0x13   :  { %s29_s19 = sshll.u32 %s89_s18, 4  ;;  %22 = vst [vmem:[#allocation5] sm:$0xff] %v21_v0  ;;  %s30_s19 = int_to_ptr.vmem [resolvable:$true] %s29_s19 }
  0x14   :  { %s62_s20 = scalar_lea.vmem %s30_s19, 128  ;;  %p67_p9 = scmp.lt.s32.totalorder %s30_s19, %s30_s19 }
  0x15   :  { %p63_p8 = scmp.ne.s32.totalorder %s30_s19, %s62_s20  ;;  %p68_p10 = scmp.lt.s32.totalorder %s62_s20, %s62_s20 }
  0x17   :  { %p69_p11 = por %p68_p10, %p67_p9 }
  0x19   :  { %p70_p12 = pnand %p69_p11, %p63_p8 }
  0x1b   :  { %73 = shalt.err (!%p70_p12)
}
  0x1c   :  { %s74_s23 = scalar_lea.hbm %s125_s1, 128 }
  0x1d   :  { %p75_p13 = scmp.ne.s32.totalorder %s125_s1, %s74_s23  ;;  %p78_p0 = scmp.lt.u32.totalorder %s74_s23, %s125_s1 }
  0x1f   :  { %p80_p1 = pnand %p78_p0, %p75_p13 }
  0x21   :  { %83 = shalt.err (!%p80_p1)
}
  0x22   :  { %32 = dma.vmem_to_hbm [thread:$0]  %s30_s19, 128, %s125_s1, [#allocation4]  }
  0x23   :  { %86 = dma.done.wait [#allocation4], 128  }
  0x24   :  { %87 = vsyncadd [#allocation4], 4294967168 }
  0x25   :  { %36 = vsyncpa [#allocation3], 1 }
  0x26   :  { %37 = vsyncpa [#allocation4], 1 }

// kernel: tpu_custom_call.1
= control target key start
LH: loop header
LB: loop body
LE: loop exit
PB: predicated region body
PF: predicated region fallthrough
CT: control target
= control target key end

     0   :  { %s3982_s0 = inlined_call_operand.hbm [shape: f32[2,8,64], index: 0, kind: input, shape index: {}]   ;;  %s3983_s1 = inlined_call_operand.hbm [shape: f32[2,8,64], index: 1, kind: input, shape index: {}]   ;;  %s3984_s2 = inlined_call_operand.hbm [shape: f32[64,64], index: 2, kind: input, shape index: {}]   ;;  %s3985_s3 = inlined_call_operand.hbm [shape: f32[64,64], index: 3, kind: input, shape index: {}]   ;;  %s3986_s4 = inlined_call_operand.hbm [shape: f32[64,64], index: 4, kind: input, shape index: {}]   ;;  %s3987_s5 = inlined_call_operand.hbm [shape: f32[64,64], index: 5, kind: input, shape index: {}]   ;;  %s3988_s6 = inlined_call_operand.vmem [shape: f32[1,64], index: 6, kind: input, shape index: {}]   ;;  %s3989_s7 = inlined_call_operand.vmem [shape: f32[1,64], index: 7, kind: input, shape index: {}]   ;;  %s3990_s8 = inlined_call_operand.vmem [shape: f32[1,64], index: 8, kind: input, shape index: {}]   ;;  %s3991_s9 = inlined_call_operand.hbm [shape: f32[2,8,64], index: 9, kind: output, shape index: {0}]   ;;  %s3992_s10 = inlined_call_operand.hbm [shape: f32[2,8,8], index: 10, kind: output, shape index: {1}]  }
   0x1   :  { %4001 = sst [smem:[#allocation28_spill]] %s3984_s2 }
   0x2   :  { %4002 = sst [smem:[#allocation29_spill]] %s3985_s3 }
   0x3   :  { %4003 = sst [smem:[#allocation30_spill]] %s3986_s4 }
   0x4   :  { %4004 = sst [smem:[#allocation31_spill]] %s3987_s5 }
   0x5   :  { %4005 = sst [smem:[#allocation32_spill]] %s3988_s6 }
   0x6   :  { %4006 = sst [smem:[#allocation33_spill]] %s3991_s9 }
   0x7   :  { %4007 = sst [smem:[#allocation34_spill]] %s3992_s10 }
   0x8   :  { %16 = vsyncpa [#allocation6], 0 }
   0x9   :  { %18 = vsyncpa [#allocation6 + $0x1], 0 }
   0xa   :  { %19 = vsyncpa [#allocation9], 0 }
   0xb   :  { %21 = vsyncpa [#allocation9 + $0x1], 0 }
   0xc   :  { %22 = vsyncpa [#allocation12], 0 }
   0xd   :  { %23 = vsyncpa [#allocation15], 0 }
   0xe   :  { %24 = vsyncpa [#allocation7], 0 }
   0xf   :  { %26 = vsyncpa [#allocation7 + $0x1], 0 }
  0x10   :  { %27 = vsyncpa [#allocation18], 0 }
  0x11   :  { %29 = vsyncpa [#allocation18 + $0x1], 0  ;;  %s3394_s13 = smov 0   ;;  %s3396_s14 = smov 0  }
  0x12   :  { %s3398_s15 = smov 0   ;;  %s3400_s16 = smov 0  }
  0x13   :  { %s3402_s17 = smov 0   ;;  %s3404_s18 = smov 0  }
  0x14 LB: > { %4008 = sst [smem:[#allocation26_spill]] %s3302_s16  ;;  %s3425_s19 = sadd.s32 4294967295, %s3310_s18   ;;  %s3310_s18 = sphi %s3404_s18, %s35_s18   ;;  %s3306_s17 = sphi %s3402_s17, %s4043_s17   ;;  %s3302_s16 = sphi %s3400_s16, %s4042_s16   ;;  %s3298_s15 = sphi %s3398_s15, %s4041_s15   ;;  %s3294_s14 = sphi %s3396_s14, %s4040_s14   ;;  %s3290_s13 = sphi %s3394_s13, %s4039_s13  }
  0x15   : > { %p2510_p0 = scmp.ge.s32.totalorder %s3310_s18, 1  ;;  %p3996_p1 = scmp.eq.s32.totalorder %s3425_s19, 0 }
  0x16   : > { %p309_p2 = scmp.lt.s32.totalorder %s3310_s18, 3  ;;  %s3312_s21 = smov [#allocation10]  }
  0x17   : > { %s321_s22 = sshll.u32 %s3312_s21, 4  ;;  %s3313_s24 = smov [#allocation11]   ;;  %s3434_s22 = int_to_ptr.vmem [resolvable:$true] %s321_s22 }
  0x18   : > { %p3430_p3 = pnand %p2510_p0, %p309_p2  ;;  %s334_s25 = sshll.u32 %s3313_s24, 4  ;;  %s3445_s25 = int_to_ptr.vmem [resolvable:$true] %s334_s25 }
  0x19   : > { %s3314_s26 = smov [#allocation13]   ;;  %s4011_s2 = sld [smem:[#allocation28_spill]] }
  0x1a   : > { %s4009_s20 = scalar_select %p3430_p3, 1, 0 }
  0x1b   : > { %p2864_p4 = pneg %p3430_p3  ;;  %s3447_s27 = sshll.u32 %s3314_s26, 4  ;;  %s348_s27 = int_to_ptr.vmem [resolvable:$true] %s3447_s27 }
  0x1d   : > { %p3441_p6 = pnand %p2864_p4, %p3996_p1 }
  0x1f   : > { %s3008_s30 = scalar_lea.hbm %s4011_s2, 1024  ;;  %p3457_p8 = pneg %p3441_p6 }
  0x20   : > { %p3009_p7 = scmp.ne.s32.totalorder %s4011_s2, %s3008_s30  ;;  %p3015_p11 = scmp.lt.u32.totalorder %s3008_s30, %s4011_s2 }
  0x22   : > { %p3011_p9 = pnand %p3457_p8, %p3009_p7 }
  0x24   : > { %p3012_p10 = pneg %p3011_p9 }
  0x26   : > { %p3017_p12 = pnand %p3015_p11, %p3012_p10 }
  0x28   : > { %3020 = shalt.err (!%p3017_p12)
}
  0x29   : > { %s3021_s28 = scalar_lea.vmem %s3434_s22, 1024  ;;  %p3029_p4 = scmp.lt.s32.totalorder %s3434_s22, %s3434_s22 }
  0x2a   : > { %p3022_p13 = scmp.ne.s32.totalorder %s3434_s22, %s3021_s28  ;;  %p3030_p5 = scmp.lt.s32.totalorder %s3021_s28, %s3021_s28 }
  0x2c   : > { %p3024_p0 = pnand %p3022_p13, %p3457_p8  ;;  %p3031_p7 = por %p3030_p5, %p3029_p4 }
  0x2e   : > { %p3025_p2 = pneg %p3024_p0 }
  0x30   : > { %p3032_p9 = pnand %p3031_p7, %p3025_p2 }
  0x32   : > { %3035 = shalt.err (!%p3032_p9)
}
  0x33   : > { %s3315_s29 = smov 128   ;;  %s3316_s30 = smov 8  }
  0x34   : > { %2867 = dma.hbm_to_vmem [thread:$0]  (!%p3441_p6), %s4011_s2, 1024, %s3434_s22, [#allocation9], %s3315_s29, %s3315_s29, %s3316_s30  }
  0x35   : > { %s4013_s3 = sld [smem:[#allocation29_spill]] }
  0x3b   : > { %s3036_s28 = scalar_lea.hbm %s4013_s3, 1024 }
  0x3c   : > { %p3037_p5 = scmp.ne.s32.totalorder %s4013_s3, %s3036_s28  ;;  %p3043_p12 = scmp.lt.u32.totalorder %s3036_s28, %s4013_s3 }
  0x3e   : > { %p3039_p10 = pnand %p3037_p5, %p3457_p8 }
  0x40   : > { %p3040_p11 = pneg %p3039_p10 }
  0x42   : > { %p3045_p13 = pnand %p3043_p12, %p3040_p11 }
  0x44   : > { %3048 = shalt.err (!%p3045_p13)
}
  0x45   : > { %s3049_s22 = scalar_lea.vmem %s3445_s25, 1024  ;;  %p3057_p7 = scmp.lt.s32.totalorder %s3445_s25, %s3445_s25 }
  0x46   : > { %p3050_p0 = scmp.ne.s32.totalorder %s3445_s25, %s3049_s22  ;;  %p3058_p9 = scmp.lt.s32.totalorder %s3049_s22, %s3049_s22 }
  0x48   : > { %p3052_p2 = pnand %p3050_p0, %p3457_p8  ;;  %p3059_p5 = por %p3058_p9, %p3057_p7 }
  0x4a   : > { %p3053_p4 = pneg %p3052_p2 }
  0x4c   : > { %p3060_p10 = pnand %p3059_p5, %p3053_p4 }
  0x4e   : > { %3063 = shalt.err (!%p3060_p10)
}
  0x4f   : > { %2870 = dma.hbm_to_vmem [thread:$0]  (!%p3441_p6), %s4013_s3, 1024, %s3445_s25, [#allocation12], %s3315_s29, %s3315_s29, %s3316_s30  }
  0x50   : > { %s4014_s4 = sld [smem:[#allocation30_spill]] }
  0x56   : > { %s3064_s11 = scalar_lea.hbm %s4014_s4, 1024 }
  0x57   : > { %p3065_p11 = scmp.ne.s32.totalorder %s4014_s4, %s3064_s11  ;;  %p3071_p0 = scmp.lt.u32.totalorder %s3064_s11, %s4014_s4 }
  0x59   : > { %p3067_p12 = pnand %p3065_p11, %p3457_p8 }
  0x5b   : > { %p3068_p13 = pneg %p3067_p12 }
  0x5d   : > { %p3073_p2 = pnand %p3071_p0, %p3068_p13 }
  0x5f   : > { %3076 = shalt.err (!%p3073_p2)
}
  0x60   : > { %s3077_s22 = scalar_lea.vmem %s348_s27, 1024  ;;  %p3085_p5 = scmp.lt.s32.totalorder %s348_s27, %s348_s27 }
  0x61   : > { %p3078_p4 = scmp.ne.s32.totalorder %s348_s27, %s3077_s22  ;;  %p3086_p10 = scmp.lt.s32.totalorder %s3077_s22, %s3077_s22 }
  0x63   : > { %p3080_p7 = pnand %p3078_p4, %p3457_p8  ;;  %p3087_p1 = por %p3086_p10, %p3085_p5 }
  0x65   : > { %p3081_p9 = pneg %p3080_p7 }
  0x67   : > { %p3088_p3 = pnand %p3087_p1, %p3081_p9 }
  0x69   : > { %3091 = shalt.err (!%p3088_p3)
}
  0x6a   : > { %2873 = dma.hbm_to_vmem [thread:$0]  (!%p3441_p6), %s4014_s4, 1024, %s348_s27, [#allocation12], %s3315_s29, %s3315_s29, %s3316_s30  }
  0x6b   : > { %s3317_s9 = smov [#allocation14]   ;;  %s4015_s5 = sld [smem:[#allocation31_spill]] }
  0x6c   : > { %s360_s10 = sshll.u32 %s3317_s9, 4  ;;  %s361_s10 = int_to_ptr.vmem [resolvable:$true] %s360_s10 }
  0x71   : > { %s3092_s12 = scalar_lea.hbm %s4015_s5, 1024 }
  0x72   : > { %p3093_p1 = scmp.ne.s32.totalorder %s4015_s5, %s3092_s12  ;;  %p3099_p12 = scmp.lt.u32.totalorder %s3092_s12, %s4015_s5 }
  0x74   : > { %p3095_p3 = pnand %p3093_p1, %p3457_p8 }
  0x76   : > { %p3096_p11 = pneg %p3095_p3 }
  0x78   : > { %p3101_p13 = pnand %p3099_p12, %p3096_p11 }
  0x7a   : > { %3104 = shalt.err (!%p3101_p13)
}
  0x7b   : > { %s3105_s27 = scalar_lea.vmem %s361_s10, 1024  ;;  %p3113_p7 = scmp.lt.s32.totalorder %s361_s10, %s361_s10 }
  0x7c   : > { %p3106_p0 = scmp.ne.s32.totalorder %s361_s10, %s3105_s27  ;;  %p3114_p9 = scmp.lt.s32.totalorder %s3105_s27, %s3105_s27 }
  0x7e   : > { %p3108_p2 = pnand %p3106_p0, %p3457_p8  ;;  %p3115_p5 = por %p3114_p9, %p3113_p7 }
  0x80   : > { %p3109_p4 = pneg %p3108_p2 }
  0x82   : > { %p3116_p10 = pnand %p3115_p5, %p3109_p4 }
  0x84   : > { %3119 = shalt.err (!%p3116_p10)
}
  0x85   : > { %2876 = dma.hbm_to_vmem [thread:$0]  (!%p3441_p6), %s4015_s5, 1024, %s361_s10, [#allocation15], %s3315_s29, %s3315_s29, %s3316_s30  }
  0x86   : > { %s2509_s23 = sadd.s32 4294967294, %s3310_s18   ;;  %s47_s21 = sadd.s32 1, %s3306_s17 }
  0x87   : > { %p49_p8 = scmp.ge.s32.totalorder %s47_s21, 2  ;;  %s56_s9 = sadd.s32 1, %s3298_s15 }
  0x88   : > { %p63_p1 = scmp.ne.s32.totalorder %s3298_s15, %s3294_s14  ;;  %p64_p3 = scmp.eq.s32.totalorder %s3310_s18, 0 }
  0x89   : > { %s4045_s21 = smov (%p49_p8, %s47_s21), 0  ;;  %p69_p12 = scmp.ne.s32.totalorder %s3294_s14, %s3290_s13 }
  0x8a   : > { %4016 = sst [smem:[#allocation27_spill]] %s4045_s21  ;;  %p3558_p11 = por %p64_p3, %p63_p1 }
  0x8b   : > { %s51_s29 = ssub.s32 %s3306_s17, %s4045_s21  ;;  %p268_p6 = scmp.eq.s32.totalorder %s3425_s19, 1 }
  0x8c   : > { %p54_p13 = scmp.eq.s32.totalorder %s51_s29, 0  ;;  %p4018_p0 = scmp.eq.s32.totalorder %s3425_s19, 0 }
  0x8d   : > { %p3573_p4 = por %p268_p6, %p63_p1  ;;  %p274_p7 = scmp.eq.s32.totalorder %s2509_s23, 1 }
  0x8e   : > { %p3569_p2 = por %p4018_p0, %p69_p12  ;;  %p2895_p5 = scmp.lt.s32.totalorder %s3310_s18, 2 }
  0x8f   : > { %s4020_s10 = scalar_select %p3573_p4, 1, 0 }
  0x90   : > { %s4019_s30 = scalar_select %p3569_p2, 1, 0 }
  0x91   : > { %s3578_s11 = scalar_select %p54_p13, %s3298_s15, %s56_s9  }
  0x92   : > { %p3580_p9 = por %p274_p7, %p69_p12  ;;  %s383_s24 = sand.u32 1, %s3298_s15  }
  0x93   : > { %s2517_s26 = sshll.u32 %s3306_s17, 7  ;;  %s3587_s28 = sshll.u32 %s383_s24, 3 }
  0x94   : > { %s4021_s12 = scalar_select %p3580_p9, 1, 0 }
  0x95   : > { %s3592_s25 = scalar_lea.hbm %s3982_s0, %s2517_s26  ;;  %s387_s6 = scalar_lea.vmem [#allocation5], %s3587_s28 }
  0x96   : > { %s395_s23 = sshll.u32 %s387_s6, 4  ;;  %p3597_p10 = pnand %p2895_p5, %p3558_p11  ;;  %s3601_s23 = int_to_ptr.vmem [resolvable:$true] %s395_s23 }
  0x97   : > { %s3606_s27 = scalar_lea.hbm %s3983_s1, %s2517_s26  ;;  %s384_s2 = scalar_lea.sflag [#allocation6], %s383_s24 }
  0x98   : > { %s3120_s3 = scalar_lea.hbm %s3592_s25, 128  ;;  %p3122_p1 = pneg %p3597_p10 }
  0x99   : > { %p3121_p8 = scmp.ne.s32.totalorder %s3592_s25, %s3120_s3  ;;  %s3125_s4 = scalar_lea.hbm %s3982_s0, 256 }
  0x9a   : > { %p3126_p12 = scmp.lt.u32.totalorder %s3592_s25, %s3982_s0  ;;  %p3127_p6 = scmp.lt.u32.totalorder %s3125_s4, %s3120_s3 }
  0x9b   : > { %p3123_p3 = pnand %p3122_p1, %p3121_p8  ;;  %p3129_p0 = scmp.lt.u32.totalorder %s3120_s3, %s3592_s25 }
  0x9c   : > { %p3128_p13 = por %p3127_p6, %p3126_p12 }
  0x9d   : > { %p3124_p11 = pneg %p3123_p3 }
  0x9e   : > { %p3130_p7 = por %p3129_p0, %p3128_p13 }
  0xa0   : > { %p3131_p5 = pnand %p3130_p7, %p3124_p11 }
  0xa2   : > { %3134 = shalt.err (!%p3131_p5)
}
  0xa3   : > { %s3135_s24 = scalar_lea.vmem %s3601_s23, 128  ;;  %s3318_s26 = smov [#allocation5]  }
  0xa4   : > { %p3136_p8 = scmp.ne.s32.totalorder %s3601_s23, %s3135_s24  ;;  %s3140_s29 = sshll.u32 %s3318_s26, 4  ;;  %s3141_s29 = int_to_ptr.vmem [resolvable:$false] %s3140_s29 }
  0xa5   : > { %s3142_s5 = scalar_lea.vmem %s3141_s29, 256  ;;  %p3143_p4 = scmp.lt.s32.totalorder %s3601_s23, %s3141_s29 }
  0xa6   : > { %p3138_p3 = pnand %p3136_p8, %p3122_p1  ;;  %p3144_p12 = scmp.lt.s32.totalorder %s3142_s5, %s3135_s24 }
  0xa8   : > { %p3139_p9 = pneg %p3138_p3  ;;  %p3145_p6 = por %p3144_p12, %p3143_p4 }
  0xaa   : > { %p3146_p13 = pnand %p3145_p6, %p3139_p9 }
  0xac   : > { %3149 = shalt.err (!%p3146_p13)
}
  0xad   : > { %2880 = dma.hbm_to_vmem [thread:$0]  (!%p3597_p10), %s3592_s25, 128, %s3601_s23, %s384_s2  }
  0xae   : > { %s402_s3 = sand.u32 1, %s3310_s18   ;;  %s406_s4 = scalar_lea.vmem [#allocation8], %s3587_s28 }
  0xaf   : > { %s413_s21 = sshll.u32 %s406_s4, 4  ;;  %s403_s22 = scalar_lea.sflag [#allocation9], %s402_s3  ;;  %s414_s21 = int_to_ptr.vmem [resolvable:$true] %s413_s21 }
  0xb0   : > { %s3150_s16 = scalar_lea.hbm %s3606_s27, 128  ;;  %s3155_s26 = scalar_lea.hbm %s3983_s1, 256 }
  0xb1   : > { %p3151_p4 = scmp.ne.s32.totalorder %s3606_s27, %s3150_s16  ;;  %p3156_p0 = scmp.lt.u32.totalorder %s3606_s27, %s3983_s1 }
  0xb2   : > { %p3157_p7 = scmp.lt.u32.totalorder %s3155_s26, %s3150_s16  ;;  %p3159_p8 = scmp.lt.u32.totalorder %s3150_s16, %s3606_s27 }
  0xb3   : > { %p3153_p9 = pnand %p3151_p4, %p3122_p1 }
  0xb4   : > { %p3158_p5 = por %p3157_p7, %p3156_p0 }
  0xb5   : > { %p3154_p11 = pneg %p3153_p9 }
  0xb6   : > { %p3160_p3 = por %p3159_p8, %p3158_p5 }
  0xb8   : > { %p3161_p12 = pnand %p3160_p3, %p3154_p11 }
  0xba   : > { %3164 = shalt.err (!%p3161_p12)
}
  0xbb   : > { %s3165_s2 = scalar_lea.vmem %s414_s21, 128  ;;  %s3319_s28 = smov [#allocation8]  }
  0xbc   : > { %p3166_p6 = scmp.ne.s32.totalorder %s414_s21, %s3165_s2  ;;  %s3170_s25 = sshll.u32 %s3319_s28, 4  ;;  %s3171_s25 = int_to_ptr.vmem [resolvable:$false] %s3170_s25 }
  0xbd   : > { %s3172_s23 = scalar_lea.vmem %s3171_s25, 256  ;;  %p3173_p9 = scmp.lt.s32.totalorder %s414_s21, %s3171_s25 }
  0xbe   : > { %p3168_p13 = pnand %p3166_p6, %p3122_p1  ;;  %p3174_p2 = scmp.lt.s32.totalorder %s3172_s23, %s3165_s2 }
  0xc0   : > { %p3169_p4 = pneg %p3168_p13  ;;  %p3175_p0 = por %p3174_p2, %p3173_p9 }
  0xc2   : > { %p3176_p7 = pnand %p3175_p0, %p3169_p4 }
  0xc4   : > { %3179 = shalt.err (!%p3176_p7)
}
  0xc5   : > { %2883 = dma.hbm_to_vmem [thread:$0]  (!%p3597_p10), %s3606_s27, 128, %s414_s21, %s403_s22  }
  0xc6   : > { %p4023_p11 = scmp.ne.s32.totalorder %s4009_s20, 0 }
  0xc7   : > { %s3657_s3 = sand.u32 (!%p4023_p11), 1, %s3294_s14   ;;  %p4024_p2 = scmp.ne.s32.totalorder (!%p4023_p11), %s4019_s30, 0 }
  0xc8   : > { %422 = sbr.rel (%p4023_p11) target bundleno = 3525 (0xdc5), region = 56  ;;  %s3660_s4 = sshll.u32 (!%p4023_p11), %s3657_s3, 3 }
  0xc9   : > { %s425_s16 = scalar_lea.sflag (!%p4023_p11), [#allocation6], %s3657_s3  ;;  %s428_s6 = scalar_lea.vmem (!%p4023_p11), [#allocation5], %s3660_s4 }
  0xcf   : > { %3261 = dma.done.wait (%p4024_p2), %s425_s16, 128  }
  0xd0   : > { %3263 = vsyncadd (%p4024_p2), %s425_s16, 4294967168  ;;  %s433_s20 = sand.u32 1, %s3425_s19   ;;  %s437_s27 = scalar_lea.vmem [#allocation8], %s3660_s4 }
  0xd1   : > { %s434_s9 = scalar_lea.sflag [#allocation9], %s433_s20 }
  0xd2   : > { %3265 = dma.done.wait (%p4024_p2), %s434_s9, 128  }
  0xd3   : > { %3267 = vsyncadd (%p4024_p2), %s434_s9, 4294967168  ;;  %p4025_p10 = scmp.eq.s32.totalorder %s3425_s19, 0 }
  0xd5   : > { %3269 = dma.done.wait (%p4025_p10), [#allocation9], 1024   ;;  %p4026_p1 = pmov %p4025_p10 }
  0xd7   : > { %3271 = vsyncadd (%p4026_p1), [#allocation9], 4294966272  ;;  %p4027_p5 = pmov %p4026_p1 }
  0xd8   : > { %p4028_p8 = pmov %p4026_p1 }
  0xd9   : > { %3273 = dma.done.wait (%p4027_p5), [#allocation12], 2048  }
  0xda   : > { %3275 = vsyncadd (%p4028_p8), [#allocation12], 4294965248  ;;  %p4029_p3 = pmov %p4026_p1 }
  0xdb   : > { %p4030_p12 = pmov %p4026_p1 }
  0xdc   : > { %3277 = dma.done.wait (%p4029_p3), [#allocation15], 1024  }
  0xdd   : > { %3279 = vsyncadd (%p4030_p12), [#allocation15], 4294966272  ;;  %vm505_vm0 = vcmask 523264   ;;  %v504_v0 = vld [vmem:[%s437_s27] sm:$0xff]  ;;  %v3686_v1 = vld [vmem:[%s428_s6] sm:$0xff]  ;;  %v3320_v19 = vmov 0.0|0.0  }
  0xde   : > { %v506_v2 = vsel %vm505_vm0, %v504_v0, 0.0  ;;  %v699_v3 = vsel %vm505_vm0, %v3686_v1, 0.0  ;;  %v536_v14 = vld [vmem:[#allocation11] sm:$0xff]  ;;  %v537_v15 = vld [vmem:[#allocation11 + $0x8] sm:$0xff]  ;;  %2792 = vmatprep.subr.bf16.mxu0 %v3320_v19  ;;  %2804 = vmatprep.subr.bf16.mxu1 %v3320_v19  ;;  %v538_v21 = vld [vmem:[#allocation11 + $0x10] sm:$0xff]  ;;  %vm3321_vm1 = vmmov 0  }
  0xdf   : > { %507 = vadd.xlane.f32.xlu0 %v506_v2  ;;  %v2793_v16 = vpack.c.bf16 %v537_v15, %v536_v14  ;;  %v618_v17 = vld [vmem:[#allocation13] sm:$0xff]  ;;  %v619_v18 = vld [vmem:[#allocation13 + $0x8] sm:$0xff]  ;;  %v539_v22 = vld [vmem:[#allocation11 + $0x18] sm:$0xff]  ;;  %v3322_v39 = vmov 0.0   ;;  %vm811_vm2 = vcmask 64512   ;;  %s3323_s24 = smov 120  }
  0xe0   : > { %v2805_v20 = vpack.c.bf16 %v619_v18, %v618_v17  ;;  %v2796_v23 = vpack.c.bf16 %v539_v22, %v538_v21  ;;  %v620_v24 = vld [vmem:[#allocation13 + $0x10] sm:$0xff]  ;;  %v621_v25 = vld [vmem:[#allocation13 + $0x18] sm:$0xff]  ;;  %v540_v27 = vld [vmem:[#allocation11 + $0x20] sm:$0xff]  ;;  %2652 = vmatprep.mubr.msk.f32.mxu0 %vm3321_vm1, %v3322_v39  ;;  %2671 = vmatprep.mubr.msk.f32.mxu1 %vm3321_vm1, %v3322_v39  ;;  %s3324_s26 = smov 112   ;;  %s3325_s29 = smov 104   ;;  %vm1149_vm3 = vcmask 130112  }
  0xe1   : > { %2794 = vmatpush3.bf16.msra.mxu0 %v2793_v16  ;;  %v2808_v26 = vpack.c.bf16 %v621_v25, %v620_v24  ;;  %v541_v28 = vld [vmem:[#allocation11 + $0x28] sm:$0xff]  ;;  %v622_v30 = vld [vmem:[#allocation13 + $0x20] sm:$0xff]  ;;  %v542_v33 = vld [vmem:[#allocation11 + $0x30] sm:$0xff]  ;;  %s3326_s5 = smov 96   ;;  %s3327_s2 = smov 88   ;;  %vm1325_vm4 = vcmask 195712  }
  0xe2   : > { %2806 = vmatpush3.bf16.msra.mxu1 %v2805_v20  ;;  %2795 = vmatprep.subr.bf16.mxu0 %v3320_v19  ;;  %v2799_v29 = vpack.c.bf16 %v541_v28, %v540_v27  ;;  %v623_v31 = vld [vmem:[#allocation13 + $0x28] sm:$0xff]  ;;  %v543_v34 = vld [vmem:[#allocation11 + $0x38] sm:$0xff]  ;;  %v624_v36 = vld [vmem:[#allocation13 + $0x30] sm:$0xff]  ;;  %s3328_s28 = smov 80   ;;  %s3329_s25 = smov 72   ;;  %vm1501_vm5 = vcmask 261312  }
  0xe3   : > { %700 = vadd.xlane.f32.xlu0 %v699_v3  ;;  %2807 = vmatprep.subr.bf16.mxu1 %v3320_v19  ;;  %v2811_v32 = vpack.c.bf16 %v623_v31, %v622_v30  ;;  %v2802_v35 = vpack.c.bf16 %v543_v34, %v542_v33  ;;  %v625_v37 = vld [vmem:[#allocation13 + $0x38] sm:$0xff]  ;;  %v2529_v47 = vld [vmem:[%s3989_s7] ss:$0 sm:$0xff]  ;;  %v729_v49 = vld [vmem:[#allocation10] sm:$0xff]  ;;  %s3330_s23 = smov 16   ;;  %s3331_s16 = smov 8  }
  0xe4   : > { %v2814_v38 = vpack.c.bf16 %v625_v37, %v624_v36  ;;  %v730_v50 = vld [vmem:[#allocation10 + $0x8] sm:$0xff]  ;;  %v731_v55 = vld [vmem:[#allocation10 + $0x10] sm:$0xff]  ;;  %v732_v56 = vld [vmem:[#allocation10 + $0x18] sm:$0xff]  ;;  %s499_s6 = scalar_lea.vmem [#allocation17], %s3660_s4  ;;  %s3332_s20 = smov 24   ;;  %vm1677_vm6 = vcmask 326912  }
  0xe5   : > { %2797 = vmatpush3.bf16.msra.mxu0 %v2796_v23  ;;  %v2530_v51 = vld [vmem:[%s3990_s8] ss:$0 sm:$0xff]  ;;  %v2817_v53 = vpack.c.bf16 %v730_v50, %v729_v49  ;;  %v2820_v57 = vpack.c.bf16 %v732_v56, %v731_v55  ;;  %v733_v58 = vld [vmem:[#allocation10 + $0x20] sm:$0xff]  ;;  %v735_v63 = vld [vmem:[#allocation10 + $0x30] sm:$0xff]  ;;  %s3333_s9 = smov 32   ;;  %s3334_s27 = smov 40  }
  0xe6   : > { %2809 = vmatpush3.bf16.msra.mxu1 %v2808_v26  ;;  %2798 = vmatprep.subr.bf16.mxu0 %v3320_v19  ;;  %v734_v59 = vld [vmem:[#allocation10 + $0x28] sm:$0xff]  ;;  %s3335_s19 = smov 48   ;;  %s3336_s30 = smov 56   ;;  %vm1853_vm7 = vcmask 392512   ;;  %vm2029_vm8 = vcmask 458112   ;;  %vm2205_vm9 = vcmask 523712  }
  0xe7   : > { %2810 = vmatprep.subr.bf16.mxu1 %v3320_v19  ;;  %v2823_v61 = vpack.c.bf16 %v734_v59, %v733_v58  ;;  %s4031_s21 = sld [smem:[#allocation26_spill]]  ;;  %p4033_p13 = scmp.ne.s32.totalorder %s4020_s10, 0 }
  0xe9   : > { %2800 = vmatpush3.bf16.msra.mxu0 %v2799_v29 }
  0xea   : > { %2812 = vmatpush3.bf16.msra.mxu1 %v2811_v32  ;;  %2801 = vmatprep.subr.bf16.mxu0 %v3320_v19 }
  0xeb   : > { %2813 = vmatprep.subr.bf16.mxu1 %v3320_v19 }
  0xed   : > { %2803 = vmatpush3.bf16.msra.mxu0 %v2802_v35  ;;  %s2564_s22 = sshll.u32 %s4031_s21, 7 }
  0xee   : > { %2815 = vmatpush3.bf16.msra.mxu1 %v2814_v38  ;;  %2816 = vmatprep.subr.bf16.mxu0 %v3320_v19 }
  0xef   : > { %2693 = vmatprep.subr.mxu1 %v3322_v39 }
 0x16c   : > { %v508_v4 = vpop.xlane.xlu0 %507 }
 0x16d   : > { %v510_v5 = vmul.f32 0.015625, %v508_v4 }
 0x16f   : > { %v3691_v6 = vsub.f32 %v504_v0, %v510_v5  ;;  %v736_v0 = vld [vmem:[#allocation10 + $0x38] sm:$0xff] }
 0x170   : > { %v701_v7 = vpop.xlane.xlu0 %700  ;;  %v2826_v2 = vpack.c.bf16 %v736_v0, %v735_v63 }
 0x171   : > { %v703_v8 = vmul.f32 0.015625, %v701_v7  ;;  %v512_v9 = vmul.f32 %v3691_v6, %v3691_v6 }
 0x173   : > { %v3696_v10 = vsub.f32 %v3686_v1, %v703_v8  ;;  %v513_v11 = vsel %vm505_vm0, %v512_v9, 0.0 }
 0x174   : > { %514 = vadd.xlane.f32.xlu1 %v513_v11 }
 0x175   : > { %v705_v12 = vmul.f32 %v3696_v10, %v3696_v10 }
 0x177   : > { %v706_v13 = vsel %vm505_vm0, %v705_v12, 0.0 }
 0x178   : > { %707 = vadd.xlane.f32.xlu1 %v706_v13 }
 0x201   : > { %v515_v40 = vpop.xlane.xlu1 %514 }
 0x202   : > { %v516_v41 = vmul.f32 0.015625, %v515_v40 }
 0x204   : > { %v517_v42 = vadd.f32 1e-05, %v516_v41 }
 0x205   : > { %v708_v43 = vpop.xlane.xlu1 %707 }
 0x206   : > { %2972 = vrsqrt.f32 %v517_v42  ;;  %v709_v44 = vmul.f32 0.015625, %v708_v43 }
 0x208   : > { %v710_v45 = vadd.f32 1e-05, %v709_v44 }
 0x20a   : > { %2974 = vrsqrt.f32 %v710_v45 }
 0x210   : > { %v2973_v46 = vpop.eup %2972 }
 0x211   : > { %v519_v48 = vmul.f32 %v2973_v46, %v3691_v6 }
 0x213   : > { %v527_v52 = vmul.f32 %v2529_v47, %v519_v48 }
 0x214   : > { %v2975_v60 = vpop.eup %2974 }
 0x215   : > { %v535_v54 = vadd.f32 %v2530_v51, %v527_v52  ;;  %v712_v62 = vmul.f32 %v2975_v60, %v3696_v10 }
 0x217   : > { %2653 = vmatmul.mubr.msk.f32.vlgmr.msra.gmra.mrb[0].mxu0 %vm505_vm0, %v535_v54  ;;  %2672 = vmatmul.mubr.msk.f32.vlgmr.msra.gmra.mrb[0].mxu1 %vm505_vm0, %v535_v54  ;;  %v720_v3 = vmul.f32 %v2529_v47, %v712_v62 }
 0x218   : > { %2818 = vmatpush3.bf16.msra.mxu0 %v2817_v53  ;;  %2690 = vmatprep.mubr.msk.f32.mxu0 %vm3321_vm1, %v3322_v39 }
 0x219   : > { %2819 = vmatprep.subr.bf16.mxu0 %v3320_v19  ;;  %2695 = vmatprep.mubr.msk.f32.mxu1 %vm3321_vm1, %v3322_v39  ;;  %v728_v4 = vadd.f32 %v2530_v51, %v720_v3 }
 0x21c   : > { %2821 = vmatpush3.bf16.msra.mxu0 %v2820_v57 }
 0x21d   : > { %2822 = vmatprep.subr.bf16.mxu0 %v3320_v19 }
 0x220   : > { %2824 = vmatpush3.bf16.msra.mxu0 %v2823_v61 }
 0x221   : > { %2825 = vmatprep.subr.bf16.mxu0 %v3320_v19 }
 0x224   : > { %2827 = vmatpush3.bf16.msra.mxu0 %v2826_v2 }
 0x225   : > { %2733 = vmatprep.subr.mxu0 %v3322_v39 }
 0x227   : > { %2691 = vmatmul.mubr.msk.f32.vlgmr.msra.gmra.mrb[2].mxu0 %vm505_vm0, %v728_v4 }
 0x228   : > { %2735 = vmatprep.mubr.msk.f32.mxu0 %vm3321_vm1, %v3322_v39 }
 0x2ea   : > { %v613_v5 = vpop.f32.mrb[0].mxu0  ;;  %v692_v6 = vpop.f32.mrb[0].mxu1 }
 0x2eb   : > { %617 = vst.msk [vmem:[#allocation2] sm:$0xff] %vm505_vm0, %v613_v5  ;;  %696 = vst.msk [vmem:[#allocation3] sm:$0xff] %vm505_vm0, %v692_v6  ;;  %v2654_v7 = vpop.f32.mrb[1].mxu0  ;;  %v2673_v8 = vpop.f32.mrb[1].mxu1 }
 0x2f2   : > { %v3739_v9 = vld [vmem:[#allocation2] sm:$0xff]  ;;  %v3748_v12 = vld [vmem:[#allocation3] sm:$0xff] }
 0x2f3   : > { %2694 = vmatpush3.xpose.msk.msra.mxu1 %vm811_vm2, %v3739_v9 }
 0x2f4   : > { %2698 = vmatprep.subr.mxu1 %v3322_v39 }
 0x2fa   : > { %v3744_v10 = vpop.f32.mrb[2].mxu0 }
 0x2fb   : > { %v2692_v11 = vpop.f32.mrb[3].mxu0  ;;  %2696 = vmatmul.mubr.msk.f32.vlgmr.msra.gmra.mrb[2].mxu1 %vm811_vm2, %v3744_v10 }
 0x2fc   : > { %2699 = vmatpush3.msra.mxu1 %v3748_v12  ;;  %2700 = vmatprep.mubr.msk.f32.mxu1 %vm3321_vm1, %v3322_v39 }
 0x2fd   : > { %2703 = vmatprep.subr.mxu1 %v3322_v39 }
 0x3ce   : > { %v884_v13 = vpop.f32.mrb[2].mxu1 }
 0x3cf   : > { %v2697_v14 = vpop.f32.mrb[3].mxu1  ;;  %v888_v15 = vsel %vm811_vm2, %v884_v13, -inf }
 0x3d0   : > { %889 = vmax.xlane.f32.xlu0 %v888_v15 }
 0x3e6   : > { %979 = vrot.lane.b32.xlu0 %v3739_v9, %s3323_s24 }
 0x45d   : > { %v890_v16 = vpop.xlane.xlu0 %889 }
 0x45e   : > { %v891_v17 = vsub.f32 %v884_v13, %v890_v16 }
 0x460   : > { %v892_v18 = vmul.f32 1.442695, %v891_v17 }
 0x461   : > { %v980_v25 = vpop.permute.xlu0 %979 }
 0x462   : > { %2976 = vpow2.f32 %v892_v18 }
 0x46c   : > { %v2977_v20 = vpop.eup %2976 }
 0x46d   : > { %v894_v21 = vsel %vm811_vm2, %v2977_v20, 0.0 }
 0x46e   : > { %895 = vadd.xlane.f32.xlu1 %v894_v21 }
 0x47f   : > { %976 = vrot.lane.b32.xlu1 %v3744_v10, %s3323_s24 }
 0x4fb   : > { %v896_v22 = vpop.xlane.xlu1 %895 }
 0x4fc   : > { %2978 = vrcp.f32 %v896_v22 }
 0x4ff   : > { %v977_v26 = vpop.permute.xlu1 %976 }
 0x506   : > { %v2979_v23 = vpop.eup %2978 }
 0x507   : > { %v3760_v24 = vmul.f32 %v2979_v23, %v2977_v20 }
 0x509   : > { %2701 = vmatmul.mubr.msk.f32.vlgmr.msra.gmra.mrb[4].mxu1 %vm811_vm2, %v3760_v24 }
 0x50a   : > { %2704 = vmatpush3.xpose.msk.msra.mxu1 %vm811_vm2, %v980_v25  ;;  %2705 = vmatprep.mubr.msk.f32.mxu1 %vm3321_vm1, %v3322_v39 }
 0x50b   : > { %2708 = vmatprep.subr.mxu1 %v3322_v39 }
 0x50d   : > { %2706 = vmatmul.mubr.msk.f32.vlgmr.msra.gmra.mrb[6].mxu1 %vm811_vm2, %v977_v26 }
 0x50e   : > { %2710 = vmatprep.mubr.msk.f32.mxu1 %vm3321_vm1, %v3322_v39 }
 0x5dc   : > { %v970_v27 = vpop.f32.mrb[4].mxu1 }
 0x5dd   : > { %974 = vst.msk [vmem:[#allocation4] sm:$0xff] %vm811_vm2, %v970_v27  ;;  %v2702_v28 = vpop.f32.mrb[5].mxu1 }
 0x5e0   : > { %v1051_v29 = vpop.f32.mrb[6].mxu1 }
 0x5e1   : > { %v2707_v30 = vpop.f32.mrb[7].mxu1  ;;  %v1055_v31 = vsel %vm811_vm2, %v1051_v29, -inf }
 0x5e2   : > { %1056 = vmax.xlane.f32.xlu1 %v1055_v31 }
 0x5f3   : > { %1155 = vrot.lane.b32.xlu1 %v3739_v9, %s3324_s26 }
 0x5f7   : > { %1152 = vrot.lane.b32.xlu1 %v3744_v10, %s3324_s26 }
 0x66f   : > { %v1057_v32 = vpop.xlane.xlu1 %1056 }
 0x670   : > { %v1058_v33 = vsub.f32 %v1051_v29, %v1057_v32 }
 0x672   : > { %v1059_v34 = vmul.f32 1.442695, %v1058_v33 }
 0x673   : > { %v1156_v41 = vpop.permute.xlu1 %1155 }
 0x674   : > { %2980 = vpow2.f32 %v1059_v34 }
 0x677   : > { %v1153_v43 = vpop.permute.xlu1 %1152 }
 0x67e   : > { %v2981_v35 = vpop.eup %2980 }
 0x67f   : > { %v1061_v36 = vsel %vm811_vm2, %v2981_v35, 0.0 }
 0x680   : > { %1062 = vadd.xlane.f32.xlu0 %v1061_v36 }
 0x696   : > { %1069 = vrot.lane.b32.xlu0 %v3748_v12, %s3323_s24 }
 0x70d   : > { %v1063_v37 = vpop.xlane.xlu0 %1062 }
 0x70e   : > { %2982 = vrcp.f32 %v1063_v37 }
 0x711   : > { %v1070_v38 = vpop.permute.xlu0 %1069 }
 0x712   : > { %2709 = vmatpush3.msra.mxu1 %v1070_v38 }
 0x713   : > { %2713 = vmatprep.subr.mxu1 %v3322_v39 }
 0x718   : > { %v2983_v40 = vpop.eup %2982 }
 0x719   : > { %v1065_v42 = vmul.f32 %v2983_v40, %v2981_v35 }
 0x71b   : > { %2711 = vmatmul.mubr.msk.f32.vlgmr.msra.gmra.mrb[8].mxu1 %vm811_vm2, %v1065_v42  ;;  %v1066_v62 = vadd.f32 %v1065_v42, %v3760_v24 }
 0x71c   : > { %2714 = vmatpush3.xpose.msk.msra.mxu1 %vm811_vm2, %v1156_v41  ;;  %2715 = vmatprep.mubr.msk.f32.mxu1 %vm3321_vm1, %v3322_v39 }
 0x71d   : > { %2718 = vmatprep.subr.mxu1 %v3322_v39 }
 0x71f   : > { %2716 = vmatmul.mubr.msk.f32.vlgmr.msra.gmra.mrb[10].mxu1 %vm811_vm2, %v1153_v43 }
 0x720   : > { %2720 = vmatprep.mubr.msk.f32.mxu1 %vm3321_vm1, %v3322_v39 }
 0x7ee   : > { %v3789_v44 = vpop.f32.mrb[8].mxu1 }
 0x7ef   : > { %v2712_v45 = vpop.f32.mrb[9].mxu1 }
 0x7f2   : > { %v1227_v46 = vpop.f32.mrb[10].mxu1 }
 0x7f3   : > { %v2717_v47 = vpop.f32.mrb[11].mxu1  ;;  %v1231_v48 = vsel %vm811_vm2, %v1227_v46, -inf }
 0x7f4   : > { %1232 = vmax.xlane.f32.xlu1 %v1231_v48 }
 0x805   : > { %1331 = vrot.lane.b32.xlu1 %v3739_v9, %s3325_s29 }
 0x809   : > { %1328 = vrot.lane.b32.xlu1 %v3744_v10, %s3325_s29 }
 0x80d   : > { %1504 = vrot.lane.b32.xlu1 %v3744_v10, %s3326_s5 }
 0x811   : > { %1680 = vrot.lane.b32.xlu1 %v3744_v10, %s3327_s2 }
 0x815   : > { %1856 = vrot.lane.b32.xlu1 %v3744_v10, %s3328_s28 }
 0x819   : > { %2032 = vrot.lane.b32.xlu1 %v3744_v10, %s3329_s25 }
 0x881   : > { %v1233_v49 = vpop.xlane.xlu1 %1232 }
 0x882   : > { %v1234_v50 = vsub.f32 %v1227_v46, %v1233_v49 }
 0x884   : > { %v1235_v51 = vmul.f32 1.442695, %v1234_v50 }
 0x885   : > { %v1332_v54 = vpop.permute.xlu1 %1331 }
 0x886   : > { %2984 = vpow2.f32 %v1235_v51 }
 0x889   : > { %v1329_v55 = vpop.permute.xlu1 %1328 }
 0x88d   : > { %v1505_v58 = vpop.permute.xlu1 %1504 }
 0x890   : > { %v2985_v52 = vpop.eup %2984 }
 0x891   : > { %v1237_v53 = vsel %vm811_vm2, %v2985_v52, 0.0  ;;  %v1681_v61 = vpop.permute.xlu1 %1680 }
 0x892   : > { %1238 = vadd.xlane.f32.xlu0 %v1237_v53 }
 0x895   : > { %v1857_v4 = vpop.permute.xlu1 %1856 }
 0x899   : > { %v2033_v6 = vpop.permute.xlu1 %2032 }
 0x8a8   : > { %1245 = vrot.lane.b32.xlu0 %v3748_v12, %s3324_s26 }
 0x8ac   : > { %1507 = vrot.lane.b32.xlu0 %v3739_v9, %s3326_s5 }
 0x8b0   : > { %1683 = vrot.lane.b32.xlu0 %v3739_v9, %s3327_s2 }
 0x8b4   : > { %1859 = vrot.lane.b32.xlu0 %v3739_v9, %s3328_s28 }
 0x8b8   : > { %2035 = vrot.lane.b32.xlu0 %v3739_v9, %s3329_s25 }
 0x91f   : > { %v1239_v56 = vpop.xlane.xlu0 %1238 }
 0x920   : > { %2986 = vrcp.f32 %v1239_v56 }
 0x923   : > { %v1246_v57 = vpop.permute.xlu0 %1245 }
 0x924   : > { %2719 = vmatpush3.msra.mxu1 %v1246_v57 }
 0x925   : > { %2723 = vmatprep.subr.mxu1 %v3322_v39 }
 0x927   : > { %v1508_v59 = vpop.permute.xlu0 %1507 }
 0x928   : > { %2734 = vmatpush3.xpose.msk.msra.mxu0 %vm811_vm2, %v1508_v59 }
 0x929   : > { %2743 = vmatprep.subr.mxu0 %v3322_v39 }
 0x92a   : > { %v2987_v60 = vpop.eup %2986 }
 0x92b   : > { %v1241_v63 = vmul.f32 %v2987_v60, %v2985_v52  ;;  %v1684_v0 = vpop.permute.xlu0 %1683  ;;  %2736 = vmatmul.mubr.msk.f32.vlgmr.msra.gmra.mrb[4].mxu0 %vm811_vm2, %v1505_v58 }
 0x92c   : > { %2744 = vmatpush3.xpose.msk.msra.mxu0 %vm811_vm2, %v1684_v0  ;;  %2745 = vmatprep.mubr.msk.f32.mxu0 %vm3321_vm1, %v3322_v39 }
 0x92d   : > { %v3823_v2 = vadd.f32 %v1241_v63, %v1066_v62  ;;  %2721 = vmatmul.mubr.msk.f32.vlgmr.msra.gmra.mrb[12].mxu1 %vm811_vm2, %v1241_v63  ;;  %2753 = vmatprep.subr.mxu0 %v3322_v39 }
 0x92e   : > { %2724 = vmatpush3.xpose.msk.msra.mxu1 %vm811_vm2, %v1332_v54  ;;  %2725 = vmatprep.mubr.msk.f32.mxu1 %vm3321_vm1, %v3322_v39 }
 0x92f   : > { %v1860_v3 = vpop.permute.xlu0 %1859  ;;  %2746 = vmatmul.mubr.msk.f32.vlgmr.msra.gmra.mrb[6].mxu0 %vm811_vm2, %v1681_v61  ;;  %2728 = vmatprep.subr.mxu1 %v3322_v39 }
 0x930   : > { %2754 = vmatpush3.xpose.msk.msra.mxu0 %vm811_vm2, %v1860_v3  ;;  %2755 = vmatprep.mubr.msk.f32.mxu0 %vm3321_vm1, %v3322_v39 }
 0x931   : > { %2726 = vmatmul.mubr.msk.f32.vlgmr.msra.gmra.mrb[14].mxu1 %vm811_vm2, %v1329_v55  ;;  %2763 = vmatprep.subr.mxu0 %v3322_v39 }
 0x932   : > { %2730 = vmatprep.mubr.msk.f32.mxu1 %vm3321_vm1, %v3322_v39 }
 0x933   : > { %v2036_v5 = vpop.permute.xlu0 %2035  ;;  %2756 = vmatmul.mubr.msk.f32.vlgmr.msra.gmra.mrb[8].mxu0 %vm811_vm2, %v1857_v4 }
 0x934   : > { %2764 = vmatpush3.xpose.msk.msra.mxu0 %vm811_vm2, %v2036_v5  ;;  %2765 = vmatprep.mubr.msk.f32.mxu0 %vm3321_vm1, %v3322_v39 }
 0x935   : > { %2828 = vmatprep.subr.bf16.mxu0 %v3320_v19 }
 0x937   : > { %2766 = vmatmul.mubr.msk.f32.vlgmr.msra.gmra.mrb[10].mxu0 %vm811_vm2, %v2033_v6 }
 0x938   : > { %2789 = vmatprep.mubr.msk.f32.mxu0 %vm3321_vm1, %v3322_v39 }
 0x9fe   : > { %v1579_v7 = vpop.f32.mrb[4].mxu0 }
 0x9ff   : > { %v2737_v8 = vpop.f32.mrb[5].mxu0  ;;  %v1583_v9 = vsel %vm811_vm2, %v1579_v7, -inf }
 0xa00   : > { %v1317_v10 = vpop.f32.mrb[12].mxu1  ;;  %1584 = vmax.xlane.f32.xlu1 %v1583_v9 }
 0xa01   : > { %v2722_v11 = vpop.f32.mrb[13].mxu1 }
 0xa02   : > { %v1755_v13 = vpop.f32.mrb[6].mxu0 }
 0xa03   : > { %v2747_v14 = vpop.f32.mrb[7].mxu0  ;;  %v1759_v21 = vsel %vm811_vm2, %v1755_v13, -inf }
 0xa04   : > { %v1403_v15 = vpop.f32.mrb[14].mxu1 }
 0xa05   : > { %v2727_v16 = vpop.f32.mrb[15].mxu1  ;;  %v1407_v17 = vsel %vm811_vm2, %v1403_v15, -inf }
 0xa06   : > { %1408 = vmax.xlane.f32.xlu0 %v1407_v17  ;;  %v1931_v18 = vpop.f32.mrb[8].mxu0  ;;  %v2208_v17 = vld [vmem:[#allocation14] sm:$0xff] }
 0xa07   : > { %v2757_v20 = vpop.f32.mrb[9].mxu0  ;;  %v1935_v24 = vsel %vm811_vm2, %v1931_v18, -inf }
 0xa0a   : > { %1760 = vmax.xlane.f32.xlu0 %v1759_v21  ;;  %v2107_v22 = vpop.f32.mrb[10].mxu0  ;;  %v2210_v21 = vld [vmem:[#allocation14 + $0x10] sm:$0xff] }
 0xa0b   : > { %v2767_v23 = vpop.f32.mrb[11].mxu0  ;;  %v2111_v25 = vsel %vm811_vm2, %v2107_v22, -inf }
 0xa0e   : > { %1936 = vmax.xlane.f32.xlu0 %v1935_v24 }
 0xa12   : > { %2112 = vmax.xlane.f32.xlu0 %v2111_v25 }
 0xa8d   : > { %v1585_v26 = vpop.xlane.xlu1 %1584 }
 0xa8e   : > { %v1586_v27 = vsub.f32 %v1579_v7, %v1585_v26  ;;  %v2212_v26 = vld [vmem:[#allocation14 + $0x20] sm:$0xff] }
 0xa90   : > { %v1587_v28 = vmul.f32 1.442695, %v1586_v27 }
 0xa92   : > { %2988 = vpow2.f32 %v1587_v28 }
 0xa93   : > { %v1409_v29 = vpop.xlane.xlu0 %1408 }
 0xa94   : > { %v1410_v30 = vsub.f32 %v1403_v15, %v1409_v29  ;;  %v2214_v29 = vld [vmem:[#allocation14 + $0x30] sm:$0xff] }
 0xa96   : > { %v1411_v50 = vmul.f32 1.442695, %v1410_v30  ;;  %v2215_v30 = vld [vmem:[#allocation14 + $0x38] sm:$0xff] }
 0xa97   : > { %v1761_v31 = vpop.xlane.xlu0 %1760 }
 0xa98   : > { %v1762_v32 = vsub.f32 %v1755_v13, %v1761_v31 }
 0xa9a   : > { %v1763_v33 = vmul.f32 1.442695, %v1762_v32  ;;  %v2838_v32 = vpack.c.bf16 %v2215_v30, %v2214_v29 }
 0xa9b   : > { %v1937_v34 = vpop.xlane.xlu0 %1936 }
 0xa9c   : > { %v2989_v35 = vpop.eup %2988  ;;  %2990 = vpow2.f32 %v1763_v33  ;;  %v1938_v36 = vsub.f32 %v1931_v18, %v1937_v34  ;;  %v2209_v18 = vld [vmem:[#allocation14 + $0x8] sm:$0xff] }
 0xa9d   : > { %v1589_v37 = vsel %vm811_vm2, %v2989_v35, 0.0  ;;  %v2829_v20 = vpack.c.bf16 %v2209_v18, %v2208_v17 }
 0xa9e   : > { %v1939_v38 = vmul.f32 1.442695, %v1938_v36  ;;  %1590 = vadd.xlane.f32.xlu0 %v1589_v37 }
 0xa9f   : > { %v2113_v40 = vpop.xlane.xlu0 %2112  ;;  %2830 = vmatpush3.bf16.msra.mxu0 %v2829_v20 }
 0xaa0   : > { %2992 = vpow2.f32 %v1939_v38  ;;  %v2114_v41 = vsub.f32 %v2107_v22, %v2113_v40  ;;  %2831 = vmatprep.subr.bf16.mxu0 %v3320_v19  ;;  %v2211_v22 = vld [vmem:[#allocation14 + $0x18] sm:$0xff] }
 0xaa1   : > { %v2832_v24 = vpack.c.bf16 %v2211_v22, %v2210_v21 }
 0xaa2   : > { %v2115_v42 = vmul.f32 1.442695, %v2114_v41 }
 0xaa3   : > { %2833 = vmatpush3.bf16.msra.mxu0 %v2832_v24 }
 0xaa4   : > { %2994 = vpow2.f32 %v2115_v42  ;;  %2834 = vmatprep.subr.bf16.mxu0 %v3320_v19 }
 0xaa5   : > { %2996 = vpow2.f32 %v1411_v50 }
 0xaa6   : > { %v2991_v43 = vpop.eup %2990 }
 0xaa7   : > { %v1765_v45 = vsel %vm811_vm2, %v2991_v43, 0.0 }
 0xaa8   : > { %1766 = vadd.xlane.f32.xlu1 %v1765_v45 }
 0xaaa   : > { %v2993_v46 = vpop.eup %2992 }
 0xaab   : > { %v1941_v47 = vsel %vm811_vm2, %v2993_v46, 0.0 }
 0xaac   : > { %1942 = vadd.xlane.f32.xlu0 %v1941_v47 }
 0xaae   : > { %v2995_v48 = vpop.eup %2994 }
 0xaaf   : > { %v2117_v49 = vsel %vm811_vm2, %v2995_v48, 0.0  ;;  %v2997_v51 = vpop.eup %2996 }
 0xab0   : > { %2118 = vadd.xlane.f32.xlu1 %v2117_v49  ;;  %v1413_v52 = vsel %vm811_vm2, %v2997_v51, 0.0 }
 0xac1   : > { %1597 = vrot.lane.b32.xlu1 %v3748_v12, %s3326_s5 }
 0xac2   : > { %1421 = vrot.lane.b32.xlu0 %v3748_v12, %s3325_s29  ;;  %s4032_s29 = sld [smem:[#allocation34_spill]] }
 0xac6   : > { %2125 = vrot.lane.b32.xlu0 %v3748_v12, %s3329_s25 }
 0xac8   : > { %s3900_s5 = scalar_lea.hbm %s4032_s29, %s2564_s22 }
 0xaca   : > { %1322 = vrot.lane.b32.xlu0 %v1317_v10, %s3330_s23  ;;  %s3337_s23 = smov [#allocation17]  }
 0xae5   : > { %1414 = vadd.xlane.f32.xlu1 %v1413_v52 }
 0xaf6   : > { %1773 = vrot.lane.b32.xlu1 %v3748_v12, %s3327_s2  ;;  %s2334_s2 = sshll.u32 %s499_s6, 4  ;;  %s2335_s2 = int_to_ptr.vmem [resolvable:$true] %s2334_s2 }
 0xaf7   : > { %s3180_s25 = scalar_lea.vmem %s2335_s2, 128 }
 0xaf8   : > { %p3181_p6 = scmp.ne.s32.totalorder %s2335_s2, %s3180_s25 }
 0xafa   : > { %1949 = vrot.lane.b32.xlu1 %v3748_v12, %s3328_s28  ;;  %s2306_s28 = scalar_lea.sflag [#allocation18], %s3657_s3  ;;  %p3182_p4 = pnand %p3181_p6, %p4033_p13 }
 0xafc   : > { %p3183_p9 = pneg %p3182_p4 }
 0xafe   : > { %1146 = vrot.lane.b32.xlu1 %v3789_v44, %s3331_s16  ;;  %s3184_s16 = sshll.u32 %s3337_s23, 4  ;;  %s3185_s16 = int_to_ptr.vmem [resolvable:$false] %s3184_s16 }
 0xaff   : > { %p3187_p0 = scmp.lt.s32.totalorder %s2335_s2, %s3185_s16 }
 0xb2b   : > { %v1591_v53 = vpop.xlane.xlu0 %1590 }
 0xb2c   : > { %2998 = vrcp.f32 %v1591_v53 }
 0xb35   : > { %v1767_v56 = vpop.xlane.xlu1 %1766 }
 0xb36   : > { %v2999_v62 = vpop.eup %2998 }
 0xb37   : > { %v1593_v5 = vmul.f32 %v2999_v62, %v2989_v35 }
 0xb39   : > { %v1943_v54 = vpop.xlane.xlu0 %1942 }
 0xb3d   : > { %v1422_v55 = vpop.permute.xlu0 %1421  ;;  %v2119_v57 = vpop.xlane.xlu1 %2118 }
 0xb3e   : > { %2729 = vmatpush3.msra.mxu1 %v1422_v55 }
 0xb3f   : > { %2738 = vmatprep.subr.mxu1 %v3322_v39 }
 0xb41   : > { %v1598_v58 = vpop.permute.xlu1 %1597  ;;  %v2126_v12 = vpop.permute.xlu0 %2125 }
 0xb45   : > { %v1323_v4 = vpop.permute.xlu0 %1322 }
 0xb72   : > { %v1415_v59 = vpop.xlane.xlu1 %1414 }
 0xb73   : > { %3000 = vrcp.f32 %v1415_v59 }
 0xb74   : > { %3002 = vrcp.f32 %v1767_v56 }
 0xb75   : > { %3004 = vrcp.f32 %v1943_v54 }
 0xb76   : > { %v1774_v60 = vpop.permute.xlu1 %1773  ;;  %3006 = vrcp.f32 %v2119_v57 }
 0xb7a   : > { %v1950_v61 = vpop.permute.xlu1 %1949 }
 0xb7d   : > { %v3001_v44 = vpop.eup %3000 }
 0xb7e   : > { %v1417_v63 = vmul.f32 %v3001_v44, %v2997_v51  ;;  %v1147_v0 = vpop.permute.xlu1 %1146  ;;  %v3003_v3 = vpop.eup %3002 }
 0xb7f   : > { %1150 = vst.msk [vmem:[#allocation4] sm:$0xff] %vm1149_vm3, %v1147_v0  ;;  %v3005_v7 = vpop.eup %3004  ;;  %v1769_v8 = vmul.f32 %v3003_v3, %v2991_v43 }
 0xb80   : > { %v1418_v6 = vadd.f32 %v1417_v63, %v3823_v2  ;;  %2731 = vmatmul.mubr.msk.f32.vlgmr.msra.gmra.mrb[16].mxu1 %vm811_vm2, %v1417_v63  ;;  %1326 = vst.msk [vmem:[#allocation4] sm:$0xff] %vm1325_vm4, %v1323_v4  ;;  %v3007_v10 = vpop.eup %3006  ;;  %v1945_v11 = vmul.f32 %v3005_v7, %v2993_v46 }
 0xb81   : > { %2739 = vmatpush3.msra.mxu1 %v1598_v58  ;;  %2740 = vmatprep.mubr.msk.f32.mxu1 %vm3321_vm1, %v3322_v39  ;;  %v2121_v2 = vmul.f32 %v3007_v10, %v2995_v48 }
 0xb82   : > { %v1594_v9 = vadd.f32 %v1593_v5, %v1418_v6  ;;  %2748 = vmatprep.subr.mxu1 %v3322_v39 }
 0xb84   : > { %v1770_v13 = vadd.f32 %v1769_v8, %v1594_v9  ;;  %2741 = vmatmul.mubr.msk.f32.vlgmr.msra.gmra.mrb[18].mxu1 %vm811_vm2, %v1593_v5 }
 0xb85   : > { %2749 = vmatpush3.msra.mxu1 %v1774_v60  ;;  %2750 = vmatprep.mubr.msk.f32.mxu1 %vm3321_vm1, %v3322_v39 }
 0xb86   : > { %2758 = vmatprep.subr.mxu1 %v3322_v39  ;;  %v1946_v14 = vadd.f32 %v1945_v11, %v1770_v13 }
 0xb88   : > { %2751 = vmatmul.mubr.msk.f32.vlgmr.msra.gmra.mrb[20].mxu1 %vm811_vm2, %v1769_v8  ;;  %v2122_v15 = vadd.f32 %v2121_v2, %v1946_v14 }
 0xb89   : > { %2759 = vmatpush3.msra.mxu1 %v1950_v61  ;;  %2760 = vmatprep.mubr.msk.f32.mxu1 %vm3321_vm1, %v3322_v39 }
 0xb8a   : > { %2768 = vmatprep.subr.mxu1 %v3322_v39  ;;  %v2298_v16 = vmul.f32 0.125, %v2122_v15 }
 0xb8c   : > { %2761 = vmatmul.mubr.msk.f32.vlgmr.msra.gmra.mrb[22].mxu1 %vm811_vm2, %v1945_v11  ;;  %2299 = vst.msk [vmem:[%s499_s6] sm:$0xff] %vm811_vm2, %v2298_v16 }
 0xb8d   : > { %2769 = vmatpush3.msra.mxu1 %v2126_v12  ;;  %2770 = vmatprep.mubr.msk.f32.mxu1 %vm3321_vm1, %v3322_v39  ;;  %v2213_v39 = vld [vmem:[#allocation14 + $0x28] sm:$0xff] }
 0xb8e   : > { %v2835_v28 = vpack.c.bf16 %v2213_v39, %v2212_v26 }
 0xb90   : > { %2771 = vmatmul.mubr.msk.f32.vlgmr.msra.gmra.mrb[24].mxu1 %vm811_vm2, %v2121_v2  ;;  %2836 = vmatpush3.bf16.msra.mxu0 %v2835_v28 }
 0xb91   : > { %2837 = vmatprep.subr.bf16.mxu0 %v3320_v19 }
 0xb94   : > { %2839 = vmatpush3.bf16.msra.mxu0 %v2838_v32 }
 0xc53   : > { %v1493_v23 = vpop.f32.mrb[16].mxu1 }
 0xc54   : > { %1498 = vrot.lane.b32.xlu1 %v1493_v23, %s3332_s20  ;;  %v2732_v25 = vpop.f32.mrb[17].mxu1  ;;  %s3186_s20 = scalar_lea.vmem %s3185_s16, 256 }
 0xc55   : > { %p3188_p7 = scmp.lt.s32.totalorder %s3186_s20, %s3180_s25 }
 0xc57   : > { %v1669_v27 = vpop.f32.mrb[18].mxu1  ;;  %p3189_p11 = por %p3188_p7, %p3187_p0 }
 0xc58   : > { %1674 = vrot.lane.b32.xlu0 %v1669_v27, %s3333_s9  ;;  %v2742_v31 = vpop.f32.mrb[19].mxu1 }
 0xc59   : > { %p3190_p2 = pnand %p3189_p11, %p3183_p9 }
 0xc5b   : > { %v1845_v33 = vpop.f32.mrb[20].mxu1 }
 0xc5c   : > { %1850 = vrot.lane.b32.xlu1 %v1845_v33, %s3334_s27  ;;  %v2752_v34 = vpop.f32.mrb[21].mxu1 }
 0xc5f   : > { %v2021_v35 = vpop.f32.mrb[22].mxu1 }
 0xc60   : > { %2026 = vrot.lane.b32.xlu0 %v2021_v35, %s3335_s19  ;;  %v2762_v36 = vpop.f32.mrb[23].mxu1 }
 0xc63   : > { %v2197_v37 = vpop.f32.mrb[24].mxu1 }
 0xc64   : > { %2202 = vrot.lane.b32.xlu1 %v2197_v37, %s3336_s30  ;;  %v2772_v38 = vpop.f32.mrb[25].mxu1 }
 0xcc6   : > { %v1499_v40 = vpop.permute.xlu1 %1498 }
 0xcc7   : > { %1502 = vst.msk [vmem:[#allocation4] sm:$0xff] %vm1501_vm5, %v1499_v40 }
 0xcca   : > { %v1675_v19 = vpop.permute.xlu0 %1674 }
 0xccb   : > { %1678 = vst.msk [vmem:[#allocation4] sm:$0xff] %vm1677_vm6, %v1675_v19 }
 0xcce   : > { %v1851_v41 = vpop.permute.xlu1 %1850 }
 0xccf   : > { %1854 = vst.msk [vmem:[#allocation4] sm:$0xff] %vm1853_vm7, %v1851_v41 }
 0xcd2   : > { %v2027_v42 = vpop.permute.xlu0 %2026 }
 0xcd3   : > { %2030 = vst.msk [vmem:[#allocation4] sm:$0xff] %vm2029_vm8, %v2027_v42 }
 0xcd6   : > { %v2203_v43 = vpop.permute.xlu1 %2202 }
 0xcd7   : > { %2206 = vst.msk [vmem:[#allocation4] sm:$0xff] %vm2205_vm9, %v2203_v43 }
 0xcde   : > { %v2207_v45 = vld [vmem:[#allocation4] sm:$0xff] }
 0xcdf   : > { %2790 = vmatmul.mubr.msk.f32.vlgmr.msra.gmra.mrb[12].mxu0 %vm505_vm0, %v2207_v45 }
 0xce0   : > { %3193 = shalt.err (!%p3190_p2)
}
 0xce1   : > { %s3194_s6 = scalar_lea.hbm %s3900_s5, 128  ;;  %s3198_s19 = scalar_lea.hbm %s4032_s29, 256 }
 0xce2   : > { %p3195_p10 = scmp.ne.s32.totalorder %s3900_s5, %s3194_s6  ;;  %p3199_p8 = scmp.lt.u32.totalorder %s3900_s5, %s4032_s29 }
 0xce3   : > { %p3200_p3 = scmp.lt.u32.totalorder %s3198_s19, %s3194_s6  ;;  %p3202_p6 = scmp.lt.u32.totalorder %s3194_s6, %s3900_s5 }
 0xce4   : > { %p3196_p1 = pnand %p3195_p10, %p4033_p13 }
 0xce5   : > { %p3201_p12 = por %p3200_p3, %p3199_p8 }
 0xce6   : > { %p3197_p5 = pneg %p3196_p1 }
 0xce7   : > { %p3203_p4 = por %p3202_p6, %p3201_p12 }
 0xce9   : > { %p3204_p9 = pnand %p3203_p4, %p3197_p5 }
 0xceb   : > { %3207 = shalt.err (!%p3204_p9)
}
 0xcec   : > { %2861 = dma.vmem_to_hbm [thread:$0]  (%p4033_p13), %s2335_s2, 128, %s3900_s5, %s2306_s28  }
 0xced   : > { %s4034_s23 = sld [smem:[#allocation32_spill]]  ;;  %s492_s16 = scalar_lea.vmem [#allocation16], %s3660_s4 }
 0xcee   : > { %s2320_s20 = sshll.u32 %s492_s16, 4  ;;  %s4035_s27 = sld [smem:[#allocation33_spill]]  ;;  %s3934_s20 = int_to_ptr.vmem [resolvable:$true] %s2320_s20 }
 0xcef   : > { %s2301_s5 = scalar_lea.sflag [#allocation7], %s3657_s3  ;;  %s3208_s4 = scalar_lea.vmem %s3934_s20, 128 }
 0xcf0   : > { %p3209_p0 = scmp.ne.s32.totalorder %s3934_s20, %s3208_s4  ;;  %s3338_s2 = smov [#allocation16]  }
 0xcf1   : > { %s3212_s21 = sshll.u32 %s3338_s2, 4  ;;  %s3213_s21 = int_to_ptr.vmem [resolvable:$false] %s3212_s21 }
 0xcf2   : > { %p3210_p7 = pnand %p3209_p0, %p4033_p13  ;;  %s3214_s28 = scalar_lea.vmem %s3213_s21, 256 }
 0xcf3   : > { %v2560_v46 = vld [vmem:[%s4034_s23] ss:$0 sm:$0xff]  ;;  %p3215_p2 = scmp.lt.s32.totalorder %s3934_s20, %s3213_s21  ;;  %p3216_p10 = scmp.lt.s32.totalorder %s3214_s28, %s3208_s4 }
 0xcf4   : > { %s3932_s19 = scalar_lea.hbm %s4035_s27, %s2564_s22  ;;  %p3211_p11 = pneg %p3210_p7 }
 0xcf5   : > { %p3217_p1 = por %p3216_p10, %p3215_p2 }
 0xcf7   : > { %p3218_p5 = pnand %p3217_p1, %p3211_p11 }
 0xdb2   : > { %v2292_v47 = vpop.f32.mrb[12].mxu0 }
 0xdb3   : > { %v2293_v48 = vadd.f32 %v2560_v46, %v2292_v47  ;;  %v2791_v49 = vpop.f32.mrb[13].mxu0 }
 0xdb5   : > { %v2296_v50 = vadd.f32 %v2293_v48, %v3686_v1 }
 0xdb7   : > { %2297 = vst.msk [vmem:[%s492_s16] sm:$0xff] %vm505_vm0, %v2296_v50 }
 0xdb8   : > { %3221 = shalt.err (!%p3218_p5)
}
 0xdb9   : > { %s3222_s3 = scalar_lea.hbm %s3932_s19, 128  ;;  %s3226_s24 = scalar_lea.hbm %s4035_s27, 256 }
 0xdba   : > { %p3223_p8 = scmp.ne.s32.totalorder %s3932_s19, %s3222_s3  ;;  %p3227_p6 = scmp.lt.u32.totalorder %s3932_s19, %s4035_s27 }
 0xdbb   : > { %p3228_p4 = scmp.lt.u32.totalorder %s3226_s24, %s3222_s3  ;;  %p3230_p0 = scmp.lt.u32.totalorder %s3222_s3, %s3932_s19 }
 0xdbc   : > { %p3224_p3 = pnand %p3223_p8, %p4033_p13 }
 0xdbd   : > { %p3229_p9 = por %p3228_p4, %p3227_p6 }
 0xdbe   : > { %p3225_p12 = pneg %p3224_p3 }
 0xdbf   : > { %p3231_p7 = por %p3230_p0, %p3229_p9 }
 0xdc1   : > { %p3232_p11 = pnand %p3231_p7, %p3225_p12 }
 0xdc3   : > { %3235 = shalt.err (!%p3232_p11)
}
 0xdc4   : > { %2860 = dma.vmem_to_hbm [thread:$0]  (%p4033_p13), %s3934_s20, 128, %s3932_s19, %s2301_s5  }
 0xdc5 PF: > { %s2346_s23 = sand.u32 1, %s3290_s13   ;;  %p4036_p2 = scmp.ne.s32.totalorder %s4021_s12, 0 }
 0xdc6   : > { %p4037_p10 = scmp.ge.s32.totalorder %s3310_s18, 2  ;;  %s2347_s16 = scalar_lea.sflag [#allocation7], %s2346_s23 }
 0xdc8   : > { %p2885_p1 = pnand %p4037_p10, %p4036_p2 }
 0xdca   : > { %3281 = dma.done.wait (!%p2885_p1), %s2347_s16, 128  }
 0xdcb   : > { %3283 = vsyncadd (!%p2885_p1), %s2347_s16, 4294967168  ;;  %s2356_s6 = scalar_lea.sflag [#allocation18], %s2346_s23 }
 0xdcc   : > { %3285 = dma.done.wait (!%p2885_p1), %s2356_s6, 128  }
 0xdcd   : > { %3287 = vsyncadd (!%p2885_p1), %s2356_s6, 4294967168  ;;  %s35_s18 = sadd.s32 1, %s3310_s18   ;;  %s4038_s10 = sld [smem:[#allocation27_spill]] }
 0xdce   : > { %p32_p5 = scmp.ge.s32.totalorder %s35_s18, 4   ;;  %s4039_s13 = smov %s3294_s14 }
 0xdcf   : > { %s4040_s14 = smov %s3298_s15  ;;  %s4041_s15 = smov %s3578_s11 }
 0xdd0   : > { %s4042_s16 = smov %s3306_s17  ;;  %34 = sbr.rel (!%p32_p5) target bundleno = 20 (0x14), region = 151 }
 0xdd3   : > { %s4043_s17 = smov %s4038_s10 }
 0xdd7   :  { %2361 = vsyncpa [#allocation6], 1 }
 0xdd8   :  { %2363 = vsyncpa [#allocation6 + $0x1], 1 }
 0xdd9   :  { %2364 = vsyncpa [#allocation9], 1 }
 0xdda   :  { %2366 = vsyncpa [#allocation9 + $0x1], 1 }
 0xddb   :  { %2367 = vsyncpa [#allocation12], 1 }
 0xddc   :  { %2368 = vsyncpa [#allocation15], 1 }
 0xddd   :  { %2369 = vsyncpa [#allocation7], 1 }
 0xdde   :  { %2371 = vsyncpa [#allocation7 + $0x1], 1 }
 0xddf   :  { %2372 = vsyncpa [#allocation18], 1 }
 0xde0   :  { %2374 = vsyncpa [#allocation18 + $0x1], 1 }

</bundles_post_ra>
